<compile_context>
chip_gen: v5e
topology: v5e:2x2
jax: 0.10.0
libtpu: 0.0.40
codegen_flags: <defaults>
</compile_context>

<pallas_src>
import jax
import jax.numpy as jnp
from jax import lax
from jax.experimental import pallas as pl
from jax.experimental.pallas import tpu as pltpu

BN_EPS = 1e-5


def _fused_input_kernel(feat_ref, w_ref, gb_ref, cap_ref, tbl_ref, o_ref):
    """One embed-dim tile (all batch rows, all timesteps) of the fused stage.

    feat_ref: (B, F)       bf16  image features (producer already emits bf16)
    w_ref:    (F, TE)      bf16  resize weight tile (pre-transposed Linear weight)
    gb_ref:   (2, TE)      f32   [gamma; beta] BatchNorm affine tile
    cap_ref:  (B, T)       int32 caption token ids
    tbl_ref:  (V, TE)      bf16  embedding-table column tile
    o_ref:    (B, 1+T, TE) bf16  GRU-input tile: row 0 = BN(resize(features)), rows 1..T = embed
    """
    # ---- resize Linear (bias dropped: exactly cancelled by the training-mode BN
    # mean subtraction below) + BatchNorm1d with batch statistics -------------
    y = jnp.dot(feat_ref[...], w_ref[...], preferred_element_type=jnp.float32)  # (B, TE) f32
    inv_b = 1.0 / y.shape[0]
    mean = jnp.sum(y, axis=0, keepdims=True) * inv_b                            # (1, TE)
    mean_sq = jnp.sum(y * y, axis=0, keepdims=True) * inv_b                     # (1, TE)
    # One-pass (biased) variance, clamped: E[y^2] - mean^2 can go slightly
    # negative in f32 when |mean| >> std -> would NaN through rsqrt.
    var = jnp.maximum(mean_sq - mean * mean, 0.0)
    inv_std = lax.rsqrt(var + BN_EPS)
    gamma = gb_ref[0:1, :]
    beta = gb_ref[1:2, :]
    scale = gamma * inv_std                                                     # (1, TE)
    shift = beta - mean * scale                                                 # (1, TE)
    o_ref[:, 0, :] = (y * scale + shift).astype(o_ref.dtype)

    # ---- embedding lookup + concat: one-hot gather on the MXU ---------------
    B, T = cap_ref.shape
    V = tbl_ref.shape[0]
    tbl = tbl_ref[...]                                    # hoisted out of the loop
    iota_v = lax.broadcasted_iota(jnp.int32, (B, V), 1)   # hoisted out of the loop
    for t in range(T):                                    # static, small trip count
        ids = cap_ref[:, t:t + 1]                                             # (B, 1) int32
        onehot = jnp.where(iota_v == ids, 1.0, 0.0).astype(tbl.dtype)         # (B, V) bf16
        emb = jnp.dot(onehot, tbl, preferred_element_type=jnp.float32)        # (B, TE) f32
        o_ref[:, t + 1, :] = emb.astype(o_ref.dtype)


def prepare_params(weight, bias, gamma, beta, embed_table):
    """One-time parameter prep (mirrors the module's state).

    weight:      (E, F) PyTorch-layout Linear weight -> stored transposed (F, E) in bf16.
    bias:        (E,)   Linear bias -- never shipped: exactly cancelled by training-mode BN.
    gamma/beta:  (E,)   BatchNorm affine -> packed into one (2, E) f32 array (single DMA).
    embed_table: (V, E) nn.Embedding weight -> bf16.
    """
    del bias  # mathematically a no-op for the training-mode BN(resize(x)) output
    w_t_bf16 = jnp.asarray(weight).T.astype(jnp.bfloat16)
    gb = jnp.stack([jnp.asarray(gamma), jnp.asarray(beta)], axis=0).astype(jnp.float32)
    emb_bf16 = jnp.asarray(embed_table).astype(jnp.bfloat16)
    return w_t_bf16, gb, emb_bf16


def decoder_gru_inputs(features_bf16, captions, w_t_bf16, gb, emb_bf16, *, e_tile=128):
    """features: (B, F) bf16, captions: (B, T) int32 -> (B, 1+T, E) bf16 GRU input."""
    B, F = features_bf16.shape
    Fw, E = w_t_bf16.shape
    V = emb_bf16.shape[0]
    T = captions.shape[1]
    assert Fw == F and E % e_tile == 0 and e_tile % 128 == 0  # lane-dense output tiles

    return pl.pallas_call(
        _fused_input_kernel,
        out_shape=jax.ShapeDtypeStruct((B, T + 1, E), jnp.bfloat16),
        grid=(E // e_tile,),
        in_specs=[
            pl.BlockSpec((B, F), lambda j: (0, 0)),         # features: resident across grid
            pl.BlockSpec((F, e_tile), lambda j: (0, j)),    # weight tile: DMA'd exactly once
            pl.BlockSpec((2, e_tile), lambda j: (0, j)),    # gamma/beta tile
            pl.BlockSpec((B, T), lambda j: (0, 0)),         # captions: resident across grid
            pl.BlockSpec((V, e_tile), lambda j: (0, j)),    # embedding-table column tile
        ],
        out_specs=pl.BlockSpec((B, T + 1, e_tile), lambda j: (0, 0, j)),
        compiler_params=pltpu.CompilerParams(
            # BN stats are per-feature -> E tiles are independent; lets v7x use both TCs.
            dimension_semantics=("parallel",),
            # NOTE: at production shapes (F~2048, large B/V) set vmem_limit_bytes here;
            # v5e's default scoped VMEM is only 16 MiB.
        ),
    )(features_bf16, w_t_bf16, gb, captions, emb_bf16)


def _reference(features_f32, weight, bias, gamma, beta, embed_table, captions, *, bf16_weight):
    """PyTorch-equivalent: Linear (with bias) + training-mode BatchNorm1d + embed + concat."""
    w = weight.astype(jnp.bfloat16).astype(jnp.float32) if bf16_weight else weight
    y = features_f32 @ w.T + bias
    mean = jnp.mean(y, axis=0, keepdims=True)
    var = jnp.mean((y - mean) ** 2, axis=0, keepdims=True)   # biased, training mode
    bn = gamma * (y - mean) * lax.rsqrt(var + BN_EPS) + beta
    emb = jnp.take(embed_table, captions, axis=0)            # (B, T, E)
    return jnp.concatenate([bn[:, None, :], emb], axis=1)    # (B, 1+T, E)


if __name__ == "__main__":
    # Small shapes consistent with the module defaults (features_size=512, embed_size=256),
    # scaled-down vocab/batch/seq: B=8, F=512, E=256, V=512, T=8.  E=256 -> grid of 2 tiles.
    B, FEAT, EMB, VOCAB, T = 8, 512, 256, 512, 8
    key = jax.random.PRNGKey(0)
    k_x, k_w, k_b, k_g, k_be, k_e, k_c = jax.random.split(key, 7)

    # Upstream CNN producer emits bf16 directly (review item: no wrapper-side cast).
    features = jax.random.normal(k_x, (B, FEAT), dtype=jnp.bfloat16)
    captions = jax.random.randint(k_c, (B, T), 0, VOCAB, dtype=jnp.int32)

    # nn.Linear-style init, PyTorch weight layout (E, F)
    bound = 1.0 / (FEAT ** 0.5)
    weight = jax.random.uniform(k_w, (EMB, FEAT), minval=-bound, maxval=bound, dtype=jnp.float32)
    bias = jax.random.uniform(k_b, (EMB,), minval=-bound, maxval=bound, dtype=jnp.float32)
    # BatchNorm affine (perturbed from default ones/zeros to exercise the fold)
    gamma = 1.0 + 0.1 * jax.random.normal(k_g, (EMB,), dtype=jnp.float32)
    beta = 0.1 * jax.random.normal(k_be, (EMB,), dtype=jnp.float32)
    # nn.Embedding default init: N(0, 1)
    embed_table = jax.random.normal(k_e, (VOCAB, EMB), dtype=jnp.float32)

    w_t_bf16, gb, emb_bf16 = prepare_params(weight, bias, gamma, beta, embed_table)

    out = decoder_gru_inputs(features, captions, w_t_bf16, gb, emb_bf16)
    out = jax.block_until_ready(out)
    assert out.shape == (B, T + 1, EMB) and out.dtype == jnp.bfloat16

    out_f32 = out.astype(jnp.float32)
    feat_f32 = features.astype(jnp.float32)

    # Embedding rows are gathered exactly (one-hot MXU gather of bf16 rows).
    emb_rows_ref = jnp.take(emb_bf16, captions, axis=0).astype(jnp.float32)
    assert jnp.allclose(out_f32[:, 1:, :], emb_rows_ref, atol=1e-2, rtol=0.0), \
        "embedding gather mismatch"

    # Tight check: reference using the same bf16-rounded weight/table (validates bias
    # cancellation, folded affine, clamped one-pass variance; remaining delta is the
    # bf16 output rounding).
    ref_tight = _reference(feat_f32, weight, bias, gamma, beta,
                           emb_bf16.astype(jnp.float32), captions, bf16_weight=True)
    assert jnp.allclose(out_f32, ref_tight, atol=2e-2, rtol=2e-2), \
        "mismatch vs bf16-weight reference"

    # Loose sanity check vs the full-f32 PyTorch-equivalent pipeline (remaining
    # difference is only the bf16 rounding of weights / table / output).
    ref_f32 = _reference(feat_f32, weight, bias, gamma, beta,
                         embed_table, captions, bf16_weight=False)
    assert jnp.allclose(out_f32, ref_f32, atol=1e-1, rtol=1e-1), \
        "mismatch vs f32 reference"

    print("KERNEL_OK")
</pallas_src>

<mosaic_0001>
module attributes {stable_mosaic.version = 11 : i64} {
  func.func @_fused_input_kernel(%arg0: i32, %arg1: memref<8x512xbf16, #tpu.memory_space<vmem>>, %arg2: memref<512x128xbf16, #tpu.memory_space<vmem>>, %arg3: memref<2x128xf32, #tpu.memory_space<vmem>>, %arg4: memref<8x8xi32, #tpu.memory_space<vmem>>, %arg5: memref<512x128xbf16, #tpu.memory_space<vmem>>, %arg6: memref<8x9x128xbf16, #tpu.memory_space<vmem>>) attributes {dimension_semantics = [#tpu.dimension_semantics<parallel>], iteration_bounds = array<i64: 2>, scalar_prefetch = 0 : i64, scratch_operands = 0 : i64, tpu.core_type = #tpu.core_type<tc>, window_params = [{pipeline_mode = #tpu.pipeline_mode<synchronous>, transform_indices = @transform_0, window_bounds = array<i64: 8, 512>}, {transform_indices = @transform_1, window_bounds = array<i64: 512, 128>}, {transform_indices = @transform_2, window_bounds = array<i64: 2, 128>}, {pipeline_mode = #tpu.pipeline_mode<synchronous>, transform_indices = @transform_3, window_bounds = array<i64: 8, 8>}, {transform_indices = @transform_4, window_bounds = array<i64: 512, 128>}, {transform_indices = @transform_5, window_bounds = array<i64: 8, 9, 128>}]} {
    %c0 = arith.constant 0 : index
    %c0_0 = arith.constant 0 : index
    %0 = vector.load %arg1[%c0, %c0_0] : memref<8x512xbf16, #tpu.memory_space<vmem>>, vector<8x512xbf16>
    %c0_1 = arith.constant 0 : index
    %c0_2 = arith.constant 0 : index
    %1 = vector.load %arg2[%c0_1, %c0_2] : memref<512x128xbf16, #tpu.memory_space<vmem>>, vector<512x128xbf16>
    %cst = arith.constant dense<0.000000e+00> : vector<8x128xf32>
    %2 = tpu.matmul %0, %1, %cst {dimension_numbers = #tpu.dot_dimension_numbers<[1], [0], [0], [1], [0, 0, 1, 1], [], []>} : vector<8x512xbf16>, vector<512x128xbf16>, vector<8x128xf32> -> vector<8x128xf32>
    %cst_3 = arith.constant dense<0.000000e+00> : vector<128xf32>
    %3 = vector.multi_reduction <add>, %2, %cst_3 [0] : vector<8x128xf32> to vector<128xf32>
    %4 = vector.shape_cast %3 : vector<128xf32> to vector<1x128xf32>
    %cst_4 = arith.constant 1.250000e-01 : f32
    %5 = vector.broadcast %cst_4 : f32 to vector<1x128xf32>
    %6 = arith.mulf %4, %5 : vector<1x128xf32>
    %7 = arith.mulf %2, %2 : vector<8x128xf32>
    %cst_5 = arith.constant dense<0.000000e+00> : vector<128xf32>
    %8 = vector.multi_reduction <add>, %7, %cst_5 [0] : vector<8x128xf32> to vector<128xf32>
    %9 = vector.shape_cast %8 : vector<128xf32> to vector<1x128xf32>
    %cst_6 = arith.constant 1.250000e-01 : f32
    %10 = vector.broadcast %cst_6 : f32 to vector<1x128xf32>
    %11 = arith.mulf %9, %10 : vector<1x128xf32>
    %12 = arith.mulf %6, %6 : vector<1x128xf32>
    %13 = arith.subf %11, %12 : vector<1x128xf32>
    %cst_7 = arith.constant 0.000000e+00 : f32
    %14 = vector.broadcast %cst_7 : f32 to vector<1x128xf32>
    %15 = arith.maximumf %13, %14 : vector<1x128xf32>
    %cst_8 = arith.constant 9.99999974E-6 : f32
    %16 = vector.broadcast %cst_8 : f32 to vector<1x128xf32>
    %17 = arith.addf %15, %16 : vector<1x128xf32>
    %18 = math.rsqrt %17 : vector<1x128xf32>
    %c0_9 = arith.constant 0 : index
    %c0_10 = arith.constant 0 : index
    %19 = vector.load %arg3[%c0_9, %c0_10] : memref<2x128xf32, #tpu.memory_space<vmem>>, vector<1x128xf32>
    %c1 = arith.constant 1 : index
    %c0_11 = arith.constant 0 : index
    %20 = vector.load %arg3[%c1, %c0_11] : memref<2x128xf32, #tpu.memory_space<vmem>>, vector<1x128xf32>
    %21 = arith.mulf %19, %18 : vector<1x128xf32>
    %22 = arith.mulf %6, %21 : vector<1x128xf32>
    %23 = arith.subf %20, %22 : vector<1x128xf32>
    %24 = vector.broadcast %21 : vector<1x128xf32> to vector<8x128xf32>
    %25 = arith.mulf %2, %24 : vector<8x128xf32>
    %26 = vector.broadcast %23 : vector<1x128xf32> to vector<8x128xf32>
    %27 = arith.addf %25, %26 : vector<8x128xf32>
    %28 = arith.truncf %27 : vector<8x128xf32> to vector<8x128xbf16>
    %c0_12 = arith.constant 0 : index
    %c0_13 = arith.constant 0 : index
    %c0_14 = arith.constant 0 : index
    %29 = vector.load %arg6[%c0_12, %c0_13, %c0_14] : memref<8x9x128xbf16, #tpu.memory_space<vmem>>, vector<8x1x128xbf16>
    %30 = vector.shape_cast %29 : vector<8x1x128xbf16> to vector<8x128xbf16>
    %31 = vector.shape_cast %28 : vector<8x128xbf16> to vector<8x1x128xbf16>
    tpu.vector_store %arg6[%c0_12, %c0_13, %c0_14], %31 {strides = array<i32>} : memref<8x9x128xbf16, #tpu.memory_space<vmem>>, vector<8x1x128xbf16>,
    %c0_15 = arith.constant 0 : index
    %c0_16 = arith.constant 0 : index
    %32 = vector.load %arg5[%c0_15, %c0_16] : memref<512x128xbf16, #tpu.memory_space<vmem>>, vector<512x128xbf16>
    %33 = tpu.iota {dimensions = array<i32: 1>} : vector<8x512xi32>
    %c0_17 = arith.constant 0 : index
    %c0_18 = arith.constant 0 : index
    %34 = vector.load %arg4[%c0_17, %c0_18] : memref<8x8xi32, #tpu.memory_space<vmem>>, vector<8x1xi32>
    %35 = vector.broadcast %34 : vector<8x1xi32> to vector<8x512xi32>
    %36 = arith.cmpi eq, %33, %35 : vector<8x512xi32>
    %cst_19 = arith.constant 1.000000e+00 : f32
    %cst_20 = arith.constant 0.000000e+00 : f32
    %37 = vector.broadcast %cst_19 : f32 to vector<8x512xf32>
    %38 = vector.broadcast %cst_20 : f32 to vector<8x512xf32>
    %39 = arith.select %36, %37, %38 : vector<8x512xi1>, vector<8x512xf32>
    %40 = arith.truncf %39 : vector<8x512xf32> to vector<8x512xbf16>
    %cst_21 = arith.constant dense<0.000000e+00> : vector<8x128xf32>
    %41 = tpu.matmul %40, %32, %cst_21 {dimension_numbers = #tpu.dot_dimension_numbers<[1], [0], [0], [1], [0, 0, 1, 1], [], []>} : vector<8x512xbf16>, vector<512x128xbf16>, vector<8x128xf32> -> vector<8x128xf32>
    %42 = arith.truncf %41 : vector<8x128xf32> to vector<8x128xbf16>
    %c0_22 = arith.constant 0 : index
    %c1_23 = arith.constant 1 : index
    %c0_24 = arith.constant 0 : index
    %43 = vector.load %arg6[%c0_22, %c1_23, %c0_24] : memref<8x9x128xbf16, #tpu.memory_space<vmem>>, vector<8x1x128xbf16>
    %44 = vector.shape_cast %43 : vector<8x1x128xbf16> to vector<8x128xbf16>
    %45 = vector.shape_cast %42 : vector<8x128xbf16> to vector<8x1x128xbf16>
    tpu.vector_store %arg6[%c0_22, %c1_23, %c0_24], %45 {strides = array<i32>} : memref<8x9x128xbf16, #tpu.memory_space<vmem>>, vector<8x1x128xbf16>,
    %c0_25 = arith.constant 0 : index
    %c1_26 = arith.constant 1 : index
    %46 = vector.load %arg4[%c0_25, %c1_26] : memref<8x8xi32, #tpu.memory_space<vmem>>, vector<8x1xi32>
    %47 = vector.broadcast %46 : vector<8x1xi32> to vector<8x512xi32>
    %48 = arith.cmpi eq, %33, %47 : vector<8x512xi32>
    %cst_27 = arith.constant 1.000000e+00 : f32
    %cst_28 = arith.constant 0.000000e+00 : f32
    %49 = vector.broadcast %cst_27 : f32 to vector<8x512xf32>
    %50 = vector.broadcast %cst_28 : f32 to vector<8x512xf32>
    %51 = arith.select %48, %49, %50 : vector<8x512xi1>, vector<8x512xf32>
    %52 = arith.truncf %51 : vector<8x512xf32> to vector<8x512xbf16>
    %cst_29 = arith.constant dense<0.000000e+00> : vector<8x128xf32>
    %53 = tpu.matmul %52, %32, %cst_29 {dimension_numbers = #tpu.dot_dimension_numbers<[1], [0], [0], [1], [0, 0, 1, 1], [], []>} : vector<8x512xbf16>, vector<512x128xbf16>, vector<8x128xf32> -> vector<8x128xf32>
    %54 = arith.truncf %53 : vector<8x128xf32> to vector<8x128xbf16>
    %c0_30 = arith.constant 0 : index
    %c2 = arith.constant 2 : index
    %c0_31 = arith.constant 0 : index
    %55 = vector.load %arg6[%c0_30, %c2, %c0_31] : memref<8x9x128xbf16, #tpu.memory_space<vmem>>, vector<8x1x128xbf16>
    %56 = vector.shape_cast %55 : vector<8x1x128xbf16> to vector<8x128xbf16>
    %57 = vector.shape_cast %54 : vector<8x128xbf16> to vector<8x1x128xbf16>
    tpu.vector_store %arg6[%c0_30, %c2, %c0_31], %57 {strides = array<i32>} : memref<8x9x128xbf16, #tpu.memory_space<vmem>>, vector<8x1x128xbf16>,
    %c0_32 = arith.constant 0 : index
    %c2_33 = arith.constant 2 : index
    %58 = vector.load %arg4[%c0_32, %c2_33] : memref<8x8xi32, #tpu.memory_space<vmem>>, vector<8x1xi32>
    %59 = vector.broadcast %58 : vector<8x1xi32> to vector<8x512xi32>
    %60 = arith.cmpi eq, %33, %59 : vector<8x512xi32>
    %cst_34 = arith.constant 1.000000e+00 : f32
    %cst_35 = arith.constant 0.000000e+00 : f32
    %61 = vector.broadcast %cst_34 : f32 to vector<8x512xf32>
    %62 = vector.broadcast %cst_35 : f32 to vector<8x512xf32>
    %63 = arith.select %60, %61, %62 : vector<8x512xi1>, vector<8x512xf32>
    %64 = arith.truncf %63 : vector<8x512xf32> to vector<8x512xbf16>
    %cst_36 = arith.constant dense<0.000000e+00> : vector<8x128xf32>
    %65 = tpu.matmul %64, %32, %cst_36 {dimension_numbers = #tpu.dot_dimension_numbers<[1], [0], [0], [1], [0, 0, 1, 1], [], []>} : vector<8x512xbf16>, vector<512x128xbf16>, vector<8x128xf32> -> vector<8x128xf32>
    %66 = arith.truncf %65 : vector<8x128xf32> to vector<8x128xbf16>
    %c0_37 = arith.constant 0 : index
    %c3 = arith.constant 3 : index
    %c0_38 = arith.constant 0 : index
    %67 = vector.load %arg6[%c0_37, %c3, %c0_38] : memref<8x9x128xbf16, #tpu.memory_space<vmem>>, vector<8x1x128xbf16>
    %68 = vector.shape_cast %67 : vector<8x1x128xbf16> to vector<8x128xbf16>
    %69 = vector.shape_cast %66 : vector<8x128xbf16> to vector<8x1x128xbf16>
    tpu.vector_store %arg6[%c0_37, %c3, %c0_38], %69 {strides = array<i32>} : memref<8x9x128xbf16, #tpu.memory_space<vmem>>, vector<8x1x128xbf16>,
    %c0_39 = arith.constant 0 : index
    %c3_40 = arith.constant 3 : index
    %70 = vector.load %arg4[%c0_39, %c3_40] : memref<8x8xi32, #tpu.memory_space<vmem>>, vector<8x1xi32>
    %71 = vector.broadcast %70 : vector<8x1xi32> to vector<8x512xi32>
    %72 = arith.cmpi eq, %33, %71 : vector<8x512xi32>
    %cst_41 = arith.constant 1.000000e+00 : f32
    %cst_42 = arith.constant 0.000000e+00 : f32
    %73 = vector.broadcast %cst_41 : f32 to vector<8x512xf32>
    %74 = vector.broadcast %cst_42 : f32 to vector<8x512xf32>
    %75 = arith.select %72, %73, %74 : vector<8x512xi1>, vector<8x512xf32>
    %76 = arith.truncf %75 : vector<8x512xf32> to vector<8x512xbf16>
    %cst_43 = arith.constant dense<0.000000e+00> : vector<8x128xf32>
    %77 = tpu.matmul %76, %32, %cst_43 {dimension_numbers = #tpu.dot_dimension_numbers<[1], [0], [0], [1], [0, 0, 1, 1], [], []>} : vector<8x512xbf16>, vector<512x128xbf16>, vector<8x128xf32> -> vector<8x128xf32>
    %78 = arith.truncf %77 : vector<8x128xf32> to vector<8x128xbf16>
    %c0_44 = arith.constant 0 : index
    %c4 = arith.constant 4 : index
    %c0_45 = arith.constant 0 : index
    %79 = vector.load %arg6[%c0_44, %c4, %c0_45] : memref<8x9x128xbf16, #tpu.memory_space<vmem>>, vector<8x1x128xbf16>
    %80 = vector.shape_cast %79 : vector<8x1x128xbf16> to vector<8x128xbf16>
    %81 = vector.shape_cast %78 : vector<8x128xbf16> to vector<8x1x128xbf16>
    tpu.vector_store %arg6[%c0_44, %c4, %c0_45], %81 {strides = array<i32>} : memref<8x9x128xbf16, #tpu.memory_space<vmem>>, vector<8x1x128xbf16>,
    %c0_46 = arith.constant 0 : index
    %c4_47 = arith.constant 4 : index
    %82 = vector.load %arg4[%c0_46, %c4_47] : memref<8x8xi32, #tpu.memory_space<vmem>>, vector<8x1xi32>
    %83 = vector.broadcast %82 : vector<8x1xi32> to vector<8x512xi32>
    %84 = arith.cmpi eq, %33, %83 : vector<8x512xi32>
    %cst_48 = arith.constant 1.000000e+00 : f32
    %cst_49 = arith.constant 0.000000e+00 : f32
    %85 = vector.broadcast %cst_48 : f32 to vector<8x512xf32>
    %86 = vector.broadcast %cst_49 : f32 to vector<8x512xf32>
    %87 = arith.select %84, %85, %86 : vector<8x512xi1>, vector<8x512xf32>
    %88 = arith.truncf %87 : vector<8x512xf32> to vector<8x512xbf16>
    %cst_50 = arith.constant dense<0.000000e+00> : vector<8x128xf32>
    %89 = tpu.matmul %88, %32, %cst_50 {dimension_numbers = #tpu.dot_dimension_numbers<[1], [0], [0], [1], [0, 0, 1, 1], [], []>} : vector<8x512xbf16>, vector<512x128xbf16>, vector<8x128xf32> -> vector<8x128xf32>
    %90 = arith.truncf %89 : vector<8x128xf32> to vector<8x128xbf16>
    %c0_51 = arith.constant 0 : index
    %c5 = arith.constant 5 : index
    %c0_52 = arith.constant 0 : index
    %91 = vector.load %arg6[%c0_51, %c5, %c0_52] : memref<8x9x128xbf16, #tpu.memory_space<vmem>>, vector<8x1x128xbf16>
    %92 = vector.shape_cast %91 : vector<8x1x128xbf16> to vector<8x128xbf16>
    %93 = vector.shape_cast %90 : vector<8x128xbf16> to vector<8x1x128xbf16>
    tpu.vector_store %arg6[%c0_51, %c5, %c0_52], %93 {strides = array<i32>} : memref<8x9x128xbf16, #tpu.memory_space<vmem>>, vector<8x1x128xbf16>,
    %c0_53 = arith.constant 0 : index
    %c5_54 = arith.constant 5 : index
    %94 = vector.load %arg4[%c0_53, %c5_54] : memref<8x8xi32, #tpu.memory_space<vmem>>, vector<8x1xi32>
    %95 = vector.broadcast %94 : vector<8x1xi32> to vector<8x512xi32>
    %96 = arith.cmpi eq, %33, %95 : vector<8x512xi32>
    %cst_55 = arith.constant 1.000000e+00 : f32
    %cst_56 = arith.constant 0.000000e+00 : f32
    %97 = vector.broadcast %cst_55 : f32 to vector<8x512xf32>
    %98 = vector.broadcast %cst_56 : f32 to vector<8x512xf32>
    %99 = arith.select %96, %97, %98 : vector<8x512xi1>, vector<8x512xf32>
    %100 = arith.truncf %99 : vector<8x512xf32> to vector<8x512xbf16>
    %cst_57 = arith.constant dense<0.000000e+00> : vector<8x128xf32>
    %101 = tpu.matmul %100, %32, %cst_57 {dimension_numbers = #tpu.dot_dimension_numbers<[1], [0], [0], [1], [0, 0, 1, 1], [], []>} : vector<8x512xbf16>, vector<512x128xbf16>, vector<8x128xf32> -> vector<8x128xf32>
    %102 = arith.truncf %101 : vector<8x128xf32> to vector<8x128xbf16>
    %c0_58 = arith.constant 0 : index
    %c6 = arith.constant 6 : index
    %c0_59 = arith.constant 0 : index
    %103 = vector.load %arg6[%c0_58, %c6, %c0_59] : memref<8x9x128xbf16, #tpu.memory_space<vmem>>, vector<8x1x128xbf16>
    %104 = vector.shape_cast %103 : vector<8x1x128xbf16> to vector<8x128xbf16>
    %105 = vector.shape_cast %102 : vector<8x128xbf16> to vector<8x1x128xbf16>
    tpu.vector_store %arg6[%c0_58, %c6, %c0_59], %105 {strides = array<i32>} : memref<8x9x128xbf16, #tpu.memory_space<vmem>>, vector<8x1x128xbf16>,
    %c0_60 = arith.constant 0 : index
    %c6_61 = arith.constant 6 : index
    %106 = vector.load %arg4[%c0_60, %c6_61] : memref<8x8xi32, #tpu.memory_space<vmem>>, vector<8x1xi32>
    %107 = vector.broadcast %106 : vector<8x1xi32> to vector<8x512xi32>
    %108 = arith.cmpi eq, %33, %107 : vector<8x512xi32>
    %cst_62 = arith.constant 1.000000e+00 : f32
    %cst_63 = arith.constant 0.000000e+00 : f32
    %109 = vector.broadcast %cst_62 : f32 to vector<8x512xf32>
    %110 = vector.broadcast %cst_63 : f32 to vector<8x512xf32>
    %111 = arith.select %108, %109, %110 : vector<8x512xi1>, vector<8x512xf32>
    %112 = arith.truncf %111 : vector<8x512xf32> to vector<8x512xbf16>
    %cst_64 = arith.constant dense<0.000000e+00> : vector<8x128xf32>
    %113 = tpu.matmul %112, %32, %cst_64 {dimension_numbers = #tpu.dot_dimension_numbers<[1], [0], [0], [1], [0, 0, 1, 1], [], []>} : vector<8x512xbf16>, vector<512x128xbf16>, vector<8x128xf32> -> vector<8x128xf32>
    %114 = arith.truncf %113 : vector<8x128xf32> to vector<8x128xbf16>
    %c0_65 = arith.constant 0 : index
    %c7 = arith.constant 7 : index
    %c0_66 = arith.constant 0 : index
    %115 = vector.load %arg6[%c0_65, %c7, %c0_66] : memref<8x9x128xbf16, #tpu.memory_space<vmem>>, vector<8x1x128xbf16>
    %116 = vector.shape_cast %115 : vector<8x1x128xbf16> to vector<8x128xbf16>
    %117 = vector.shape_cast %114 : vector<8x128xbf16> to vector<8x1x128xbf16>
    tpu.vector_store %arg6[%c0_65, %c7, %c0_66], %117 {strides = array<i32>} : memref<8x9x128xbf16, #tpu.memory_space<vmem>>, vector<8x1x128xbf16>,
    %c0_67 = arith.constant 0 : index
    %c7_68 = arith.constant 7 : index
    %118 = vector.load %arg4[%c0_67, %c7_68] : memref<8x8xi32, #tpu.memory_space<vmem>>, vector<8x1xi32>
    %119 = vector.broadcast %118 : vector<8x1xi32> to vector<8x512xi32>
    %120 = arith.cmpi eq, %33, %119 : vector<8x512xi32>
    %cst_69 = arith.constant 1.000000e+00 : f32
    %cst_70 = arith.constant 0.000000e+00 : f32
    %121 = vector.broadcast %cst_69 : f32 to vector<8x512xf32>
    %122 = vector.broadcast %cst_70 : f32 to vector<8x512xf32>
    %123 = arith.select %120, %121, %122 : vector<8x512xi1>, vector<8x512xf32>
    %124 = arith.truncf %123 : vector<8x512xf32> to vector<8x512xbf16>
    %cst_71 = arith.constant dense<0.000000e+00> : vector<8x128xf32>
    %125 = tpu.matmul %124, %32, %cst_71 {dimension_numbers = #tpu.dot_dimension_numbers<[1], [0], [0], [1], [0, 0, 1, 1], [], []>} : vector<8x512xbf16>, vector<512x128xbf16>, vector<8x128xf32> -> vector<8x128xf32>
    %126 = arith.truncf %125 : vector<8x128xf32> to vector<8x128xbf16>
    %c0_72 = arith.constant 0 : index
    %c8 = arith.constant 8 : index
    %c0_73 = arith.constant 0 : index
    %127 = vector.load %arg6[%c0_72, %c8, %c0_73] : memref<8x9x128xbf16, #tpu.memory_space<vmem>>, vector<8x1x128xbf16>
    %128 = vector.shape_cast %127 : vector<8x1x128xbf16> to vector<8x128xbf16>
    %129 = vector.shape_cast %126 : vector<8x128xbf16> to vector<8x1x128xbf16>
    tpu.vector_store %arg6[%c0_72, %c8, %c0_73], %129 {strides = array<i32>} : memref<8x9x128xbf16, #tpu.memory_space<vmem>>, vector<8x1x128xbf16>,
    return
  }
  func.func @transform_0(%arg0: i32) -> (i32, i32) {
    %c0_i32 = arith.constant 0 : i32
    %c0_i32_0 = arith.constant 0 : i32
    %c0_i32_1 = arith.constant 0 : i32
    return %c0_i32, %c0_i32_0 : i32, i32
  }
  func.func @transform_1(%arg0: i32) -> (i32, i32) {
    %c0_i32 = arith.constant 0 : i32
    %c0_i32_0 = arith.constant 0 : i32
    return %c0_i32, %arg0 : i32, i32
  }
  func.func @transform_2(%arg0: i32) -> (i32, i32) {
    %c0_i32 = arith.constant 0 : i32
    %c0_i32_0 = arith.constant 0 : i32
    return %c0_i32, %arg0 : i32, i32
  }
  func.func @transform_3(%arg0: i32) -> (i32, i32) {
    %c0_i32 = arith.constant 0 : i32
    %c0_i32_0 = arith.constant 0 : i32
    %c0_i32_1 = arith.constant 0 : i32
    return %c0_i32, %c0_i32_0 : i32, i32
  }
  func.func @transform_4(%arg0: i32) -> (i32, i32) {
    %c0_i32 = arith.constant 0 : i32
    %c0_i32_0 = arith.constant 0 : i32
    return %c0_i32, %arg0 : i32, i32
  }
  func.func @transform_5(%arg0: i32) -> (i32, i32, i32) {
    %c0_i32 = arith.constant 0 : i32
    %c0_i32_0 = arith.constant 0 : i32
    %c0_i32_1 = arith.constant 0 : i32
    return %c0_i32, %c0_i32_0, %arg0 : i32, i32, i32
  }
}

</mosaic_0001>

<bundles_post_ra>
// kernel: tpu_custom_call.1
= control target key start
LH: loop header
LB: loop body
LE: loop exit
PB: predicated region body
PF: predicated region fallthrough
CT: control target
= control target key end

     0   :  { %s4689_s0 = inlined_call_operand.hbm [shape: bf16[8,512], index: 0, kind: input, shape index: {}]   ;;  %s4690_s1 = inlined_call_operand.hbm [shape: bf16[512,256], index: 1, kind: input, shape index: {}]   ;;  %s4691_s2 = inlined_call_operand.hbm [shape: f32[2,256], index: 2, kind: input, shape index: {}]   ;;  %s4692_s3 = inlined_call_operand.hbm [shape: s32[8,8], index: 3, kind: input, shape index: {}]   ;;  %s4693_s4 = inlined_call_operand.hbm [shape: bf16[512,256], index: 4, kind: input, shape index: {}]   ;;  %s4694_s5 = inlined_call_operand.vmem [shape: bf16[8,9,256], index: 5, kind: output, shape index: {}]  }
   0x1   :  { %4702 = sst [smem:[#allocation18_spill]] %s4689_s0 }
   0x2   :  { %4703 = sst [smem:[#allocation19_spill]] %s4690_s1 }
   0x3   :  { %10 = vsyncpa [#allocation3], 0 }
   0x4   :  { %11 = vsyncpa [#allocation5], 0 }
   0x5   :  { %13 = vsyncpa [#allocation5 + $0x1], 0 }
   0x6   :  { %14 = vsyncpa [#allocation8], 0  ;;  %s3444_s18 = smov 0   ;;  %s3446_s19 = smov 0  }
   0x7   :  { %s3448_s20 = smov 0   ;;  %s3450_s21 = smov 0  }
   0x8 LB: > { %s3463_s22 = sadd.s32 4294967295, %s3397_s21   ;;  %s3466_s23 = sadd.s32 1, %s3397_s21   ;;  %s3397_s21 = sphi %s3450_s21, %s4755_s21   ;;  %s3393_s20 = sphi %s3448_s20, %s4759_s20   ;;  %s3389_s19 = sphi %s3446_s19, %s4758_s19   ;;  %s3385_s18 = sphi %s3444_s18, %s4757_s18  }
   0x9   : > { %4704 = sst [smem:[#allocation15_spill]] %s3466_s23  ;;  %s45_s24 = ssub.s32 %s3397_s21, %s3466_s23 }
   0xa   : > { %s48_s25 = sadd.s32 1, %s3393_s20  ;;  %p46_p0 = scmp.eq.s32.totalorder %s45_s24, 0 }
   0xb   : > { %p55_p1 = scmp.ne.s32.totalorder %s3393_s20, %s3389_s19  ;;  %p56_p2 = scmp.eq.s32.totalorder %s3397_s21, 0 }
   0xc   : > { %p61_p3 = scmp.ne.s32.totalorder %s3389_s19, %s3385_s18  ;;  %p62_p5 = scmp.eq.s32.totalorder %s3463_s22, 0 }
   0xd   : > { %s3476_s26 = scalar_select %p46_p0, %s3393_s20, %s48_s25  }
   0xe   : > { %p3478_p4 = por %p56_p2, %p55_p1  ;;  %p158_p6 = scmp.eq.s32.totalorder %s3463_s22, 1 }
   0xf   : > { %4705 = sst [smem:[#allocation16_spill]] %s3476_s26  ;;  %p2634_p7 = scmp.ge.s32.totalorder %s3397_s21, 1 }
  0x10   : > { %p3487_p8 = por %p62_p5, %p61_p3  ;;  %p171_p9 = scmp.lt.s32.totalorder %s3397_s21, 3 }
  0x11   : > { %p3492_p10 = por %p158_p6, %p55_p1  ;;  %s4710_s0 = sld [smem:[#allocation18_spill]] }
  0x12   : > { %p3496_p11 = pnand %p2634_p7, %p171_p9  ;;  %s3399_s9 = smov [#allocation2]  }
  0x13   : > { %s185_s10 = sshll.u32 %s3399_s9, 4  ;;  %p3108_p0 = scmp.lt.s32.totalorder %s3397_s21, 2  ;;  %s186_s10 = int_to_ptr.vmem [resolvable:$true] %s185_s10 }
  0x14   : > { %p3089_p12 = pneg %p3496_p11  ;;  %s4695_s12 = sand.u32 1, %s3397_s21  }
  0x15   : > { %s4696_s13 = sand.u32 1, %s3393_s20   ;;  %p3516_p1 = pnand %p3108_p0, %p3478_p4 }
  0x16   : > { %p3507_p13 = pnand %p3089_p12, %p62_p5  ;;  %s3524_s15 = sshll.u32 %s4696_s13, 8 }
  0x17   : > { %s183_s8 = sshll.u32 %s4710_s0, 4  ;;  %s4697_s16 = sshll.u32 %s3397_s21, 2  ;;  %s184_s8 = int_to_ptr.hbm [resolvable:$true] %s183_s8 }
  0x18   : > { %3092 = dma.hbm_to_vmem [thread:$0]  (!%p3507_p13), %s184_s8, 256, %s186_s10, [#allocation3]  }
  0x19   : > { %s4713_s1 = sld [smem:[#allocation19_spill]]  ;;  %s212_s27 = scalar_lea.vmem [#allocation4], %s3524_s15 }
  0x1a   : > { %s219_s6 = sshll.u32 %s212_s27, 4  ;;  %s3535_s7 = scalar_lea.sflag [#allocation5], %s4695_s12  ;;  %s220_s6 = int_to_ptr.vmem [resolvable:$true] %s219_s6 }
  0x1b   : > { %p3235_p3 = pneg %p3516_p1 }
  0x1f   : > { %s216_s24 = scalar_lea.hbm %s4713_s1, %s4697_s16  ;;  %s3238_s18 = scalar_lea.hbm %s4713_s1, 512 }
  0x20   : > { %s217_s25 = sshll.u32 %s216_s24, 4  ;;  %s218_s25 = int_to_ptr.hbm [resolvable:$true] %s217_s25 }
  0x21   : > { %s3231_s9 = sshra.s32 %s218_s25, 4  ;;  %s3232_s9 = int_to_ptr.hbm [resolvable:$true] %s3231_s9 }
  0x22   : > { %s3233_s8 = scalar_lea.hbm %s3232_s9, 256  ;;  %p3239_p7 = scmp.lt.s32.totalorder %s3232_s9, %s4713_s1 }
  0x23   : > { %p3234_p2 = scmp.ne.s32.totalorder %s3232_s9, %s3233_s8  ;;  %p3240_p9 = scmp.lt.s32.totalorder %s3238_s18, %s3233_s8 }
  0x25   : > { %p3236_p4 = pnand %p3235_p3, %p3234_p2  ;;  %p3241_p12 = por %p3240_p9, %p3239_p7 }
  0x27   : > { %p3237_p6 = pneg %p3236_p4 }
  0x29   : > { %p3242_p0 = pnand %p3241_p12, %p3237_p6 }
  0x2b   : > { %3245 = shalt.err (!%p3242_p0)
}
  0x2c   : > { %s4701_s12 = smov 128   ;;  %s3401_s13 = smov 64  }
  0x2d   : > { %s3402_s16 = smov 4   ;;  %s4714_s9 = sshll.u32 %s3397_s21, 2 }
  0x2e   : > { %3099 = dma.hbm_to_vmem [thread:$0]  (!%p3516_p1), %s218_s25, 4096, %s220_s6, %s3535_s7, %s4701_s12, %s3401_s13, %s3402_s16  }
  0x2f   : > { %s256_s17 = scalar_lea.hbm %s4693_s4, %s4714_s9  ;;  %s252_s24 = scalar_lea.vmem [#allocation9], %s3524_s15 }
  0x30   : > { %s257_s18 = sshll.u32 %s256_s17, 4  ;;  %s3560_s27 = sshll.u32 %s252_s24, 4  ;;  %s3562_s18 = int_to_ptr.hbm [resolvable:$true] %s257_s18 }
  0x31   : > { %4715 = sst [smem:[#allocation17_spill]] %s3560_s27  ;;  %s195_s26 = sshll.u32 %s4692_s3, 4  ;;  %s196_s26 = int_to_ptr.hbm [resolvable:$true] %s195_s26 }
  0x32   : > { %s3403_s23 = smov [#allocation7]   ;;  %s4716_s6 = sand.u32 1, %s3393_s20  }
  0x33   : > { %s197_s25 = sshll.u32 %s3403_s23, 4  ;;  %s2640_s8 = sshll.u32 %s4716_s6, 1  ;;  %s198_s25 = int_to_ptr.vmem [resolvable:$true] %s197_s25 }
  0x34   : > { %3095 = dma.hbm_to_vmem [thread:$0]  (!%p3507_p13), %s196_s26, 128, %s198_s25, [#allocation8]  }
  0x35   : > { %s2641_s15 = sshll.u32 %s3397_s21, 1  ;;  %s233_s24 = scalar_lea.vmem [#allocation6], %s2640_s8 }
  0x36   : > { %s237_s17 = scalar_lea.hbm %s4691_s2, %s2641_s15  ;;  %s241_s27 = sshll.u32 %s233_s24, 4  ;;  %s242_s27 = int_to_ptr.vmem [resolvable:$true] %s241_s27 }
  0x37   : > { %s239_s12 = sshll.u32 %s237_s17, 4  ;;  %s3298_s11 = scalar_lea.hbm %s4691_s2, 4  ;;  %s240_s12 = int_to_ptr.hbm [resolvable:$true] %s239_s12 }
  0x38   : > { %s3291_s0 = sshra.s32 %s240_s12, 4  ;;  %s3292_s0 = int_to_ptr.hbm [resolvable:$true] %s3291_s0 }
  0x39   : > { %s3293_s1 = scalar_lea.hbm %s3292_s0, 2  ;;  %p3299_p13 = scmp.lt.s32.totalorder %s3292_s0, %s4691_s2 }
  0x3a   : > { %p3294_p2 = scmp.ne.s32.totalorder %s3292_s0, %s3293_s1  ;;  %p3300_p7 = scmp.lt.s32.totalorder %s3298_s11, %s3293_s1 }
  0x3c   : > { %p3296_p4 = pnand %p3294_p2, %p3235_p3  ;;  %p3301_p9 = por %p3300_p7, %p3299_p13 }
  0x3e   : > { %p3297_p6 = pneg %p3296_p4 }
  0x40   : > { %p3302_p12 = pnand %p3301_p9, %p3297_p6 }
  0x42   : > { %3305 = shalt.err (!%p3302_p12)
}
  0x43   : > { %3102 = dma.hbm_to_vmem [thread:$0]  (!%p3516_p1), %s240_s12, 32, %s242_s27, %s3535_s7  }
  0x44   : > { %s4717_s8 = sand.u32 1, %s3397_s21   ;;  %s3321_s9 = sshra.s32 %s3562_s18, 4  ;;  %s3322_s9 = int_to_ptr.hbm [resolvable:$true] %s3321_s9 }
  0x45   : > { %s249_s15 = scalar_lea.sflag [#allocation3], %s4717_s8  ;;  %s3323_s10 = scalar_lea.hbm %s3322_s9, 256 }
  0x46   : > { %p3324_p0 = scmp.ne.s32.totalorder %s3322_s9, %s3323_s10  ;;  %s3328_s0 = scalar_lea.hbm %s4693_s4, 512 }
  0x47   : > { %p3329_p6 = scmp.lt.s32.totalorder %s3322_s9, %s4693_s4  ;;  %p3330_p13 = scmp.lt.s32.totalorder %s3328_s0, %s3323_s10 }
  0x48   : > { %p3326_p2 = pnand %p3324_p0, %p3235_p3 }
  0x49   : > { %p3331_p7 = por %p3330_p13, %p3329_p6 }
  0x4a   : > { %p3327_p4 = pneg %p3326_p2 }
  0x4c   : > { %p3332_p9 = pnand %p3331_p7, %p3327_p4 }
  0x4e   : > { %3335 = shalt.err (!%p3332_p9)
}
  0x4f   : > { %s4718_s21 = smov 128   ;;  %s4719_s12 = sld [smem:[#allocation17_spill]] }
  0x52   : > { %271 = sbr.rel (%p3496_p11) target bundleno = 573 (0x23d), region = 40 }
  0x55   : > { %s4720_s7 = int_to_ptr.vmem [resolvable:$true] %s4719_s12 }
  0x56   : > { %3105 = dma.hbm_to_vmem [thread:$0]  (!%p3516_p1), %s3562_s18, 4096, %s4720_s7, %s249_s15, %s4718_s21, %s3401_s13, %s3402_s16  }
  0x57   : > { %3368 = dma.done.wait (%p62_p5), [#allocation3], 256  }
  0x58   : > { %3370 = vsyncadd (%p62_p5), [#allocation3], 4294967040  ;;  %s278_s14 = sand.u32 1, %s3463_s22   ;;  %s3616_s27 = sand.u32 1, %s3389_s19  }
  0x59   : > { %s2646_s26 = sshll.u32 %s3616_s27, 8  ;;  %s279_s11 = scalar_lea.sflag [#allocation5], %s278_s14 }
  0x5a   : > { %s3619_s25 = scalar_lea.vmem [#allocation4], %s2646_s26 }
  0x5b   : > { %3372 = dma.done.wait (%p3487_p8), %s279_s11, 4128  }
  0x5c   : > { %3374 = vsyncadd (%p3487_p8), %s279_s11, 4294963168  ;;  %s2647_s30 = sshll.u32 %s3616_s27, 1 }
  0x5d   : > { %s3626_s13 = scalar_lea.vmem [#allocation6], %s2647_s30 }
  0x5e   : > { %3376 = dma.done.wait (%p62_p5), [#allocation8], 128  }
  0x5f   : > { %3378 = vsyncadd (%p62_p5), [#allocation8], 4294967168  ;;  %s304_s16 = scalar_lea.sflag [#allocation3], %s278_s14  ;;  %s3632_s18 = scalar_lea.vmem [#allocation9], %s2646_s26 }
  0x60   : > { %3380 = dma.done.wait (%p3487_p8), %s304_s16, 4096  }
  0x61   : > { %3382 = vsyncadd (%p3487_p8), %s304_s16, 4294963200  ;;  %v3404_v0 = vmov 0   ;;  %v3405_v1 = vmov 2   ;;  %v3638_v2 = vld [vmem:[#allocation7] sm:$0xff]  ;;  %v3034_v3 = vld [vmem:[%s3619_s25 + $0xb8] sm:$0xff]  ;;  %v3406_v15 = vmov 1  }
  0x62   : > { %3158 = vset.pattern.permute.xlu0 %v3404_v0  ;;  %3160 = vset.pattern.permute.xlu1 %v3405_v1  ;;  %v3042_v4 = vld [vmem:[%s3619_s25 + $0xf8] sm:$0xff]  ;;  %v3033_v7 = vld [vmem:[%s3619_s25 + $0xb0] sm:$0xff]  ;;  %v3032_v11 = vld [vmem:[%s3619_s25 + $0xa8] sm:$0xff]  ;;  %v3407_v24 = vmov 3   ;;  %s2650_s28 = sshll.u32 %s3616_s27, 6  ;;  %s3008_s8 = sshll.u32 (%p3492_p10), %s3463_s22, 2 }
  0x63   : > { %880 = vperm.xlu0 %3158, %v3638_v2   ;;  %v3018_v5 = vld [vmem:[%s3619_s25 + $0x38] sm:$0xff]  ;;  %1405 = vperm.xlu1 %3160, %v3638_v2   ;;  %v3041_v8 = vld [vmem:[%s3619_s25 + $0xf0] sm:$0xff]  ;;  %v3040_v12 = vld [vmem:[%s3619_s25 + $0xe8] sm:$0xff]  ;;  %s4039_s6 = scalar_lea.vmem [#allocation10], %s2650_s28  ;;  %s2407_s10 = scalar_lea.vmem (%p3492_p10), %s4694_s5, %s3008_s8 }
  0x64   : > { %v3026_v6 = vld [vmem:[%s3619_s25 + $0x78] sm:$0xff]  ;;  %642 = vmatpush.bf16.msra.mxu2 %v3034_v3  ;;  %655 = vmatpush.bf16.msra.mxu3 %v3042_v4  ;;  %v3017_v9 = vld [vmem:[%s3619_s25 + $0x30] sm:$0xff]  ;;  %v3016_v13 = vld [vmem:[%s3619_s25 + $0x28] sm:$0xff] }
  0x65   : > { %616 = vmatpush.bf16.msra.mxu0 %v3018_v5  ;;  %629 = vmatpush.bf16.msra.mxu1 %v3026_v6  ;;  %v3025_v10 = vld [vmem:[%s3619_s25 + $0x70] sm:$0xff]  ;;  %v3024_v14 = vld [vmem:[%s3619_s25 + $0x68] sm:$0xff]  ;;  %v3031_v16 = vld [vmem:[%s3619_s25 + $0xa0] sm:$0xff] }
  0x66   : > { %v3039_v17 = vld [vmem:[%s3619_s25 + $0xe0] sm:$0xff]  ;;  %v3030_v20 = vld [vmem:[%s3619_s25 + $0x98] sm:$0xff]  ;;  %v3029_v25 = vld [vmem:[%s3619_s25 + $0x90] sm:$0xff] }
  0x67   : > { %v3015_v18 = vld [vmem:[%s3619_s25 + $0x20] sm:$0xff]  ;;  %v3038_v21 = vld [vmem:[%s3619_s25 + $0xd8] sm:$0xff]  ;;  %v3037_v26 = vld [vmem:[%s3619_s25 + $0xd0] sm:$0xff] }
  0x68   : > { %643 = vmatpush.bf16.msra.mxu2 %v3033_v7  ;;  %656 = vmatpush.bf16.msra.mxu3 %v3041_v8  ;;  %v3023_v19 = vld [vmem:[%s3619_s25 + $0x60] sm:$0xff]  ;;  %v3014_v22 = vld [vmem:[%s3619_s25 + $0x18] sm:$0xff]  ;;  %v3013_v27 = vld [vmem:[%s3619_s25 + $0x10] sm:$0xff] }
  0x69   : > { %617 = vmatpush.bf16.msra.mxu0 %v3017_v9  ;;  %630 = vmatpush.bf16.msra.mxu1 %v3025_v10  ;;  %v3022_v23 = vld [vmem:[%s3619_s25 + $0x58] sm:$0xff]  ;;  %v3021_v28 = vld [vmem:[%s3619_s25 + $0x50] sm:$0xff]  ;;  %v3028_v29 = vld [vmem:[%s3619_s25 + $0x88] sm:$0xff] }
  0x6a   : > { %v345_v30 = vld [vmem:[#allocation2 + $0x8] sm:$0xff]  ;;  %v3036_v31 = vld [vmem:[%s3619_s25 + $0xc8] sm:$0xff]  ;;  %v344_v33 = vld [vmem:[#allocation2] sm:$0xff] }
  0x6b   : > { %3159 = vset.pattern.permute.xlu0 %v3406_v15  ;;  %3161 = vset.pattern.permute.xlu1 %v3407_v24  ;;  %v3012_v32 = vld [vmem:[%s3619_s25 + $0x8] sm:$0xff]  ;;  %v414_v35 = vunpack.c.l.b16 %v345_v30  ;;  %v3027_v36 = vld [vmem:[%s3619_s25 + $0x80] sm:$0xff]  ;;  %v415_v37 = vunpack.c.h.b16 %v345_v30  ;;  %v412_v38 = vunpack.c.l.b16 %v344_v33  ;;  %v413_v41 = vunpack.c.h.b16 %v344_v33  ;;  %v3706_v55 = vld [vmem:[%s3632_s18 + $0x28] sm:$0xff] }
  0x6c   : > { %1238 = vperm.xlu0 %3159, %v3638_v2   ;;  %644 = vmatpush.bf16.msra.mxu2 %v3032_v11  ;;  %v3020_v34 = vld [vmem:[%s3619_s25 + $0x48] sm:$0xff]  ;;  %v3035_v39 = vld [vmem:[%s3619_s25 + $0xc0] sm:$0xff]  ;;  %v3710_v56 = vld [vmem:[%s3632_s18 + $0x68] sm:$0xff]  ;;  %v3410_v24 = vmov 6  }
  0x6d   : > { %657 = vmatpush.bf16.msra.mxu3 %v3040_v12  ;;  %618 = vmatpush.bf16.msra.mxu0 %v3016_v13  ;;  %v3011_v40 = vld [vmem:[%s3619_s25] sm:$0xff]  ;;  %v418_v44 = vpack.c.b16 %v414_v35, %v414_v35  ;;  %v419_v46 = vpack.c.b16 %v415_v37, %v415_v37  ;;  %v416_v47 = vpack.c.b16 %v412_v38, %v412_v38  ;;  %v3714_v57 = vld [vmem:[%s3632_s18 + $0xa8] sm:$0xff]  ;;  %v3722_v59 = vld [vmem:[%s3632_s18 + $0x20] sm:$0xff] }
  0x6e   : > { %631 = vmatpush.bf16.msra.mxu1 %v3024_v14  ;;  %1571 = vperm.xlu1 %3161, %v3638_v2   ;;  %v3019_v42 = vld [vmem:[%s3619_s25 + $0x40] sm:$0xff]  ;;  %v417_v48 = vpack.c.b16 %v413_v41, %v413_v41  ;;  %v3719_v58 = vld [vmem:[%s3632_s18 + $0xe8] sm:$0xff]  ;;  %v3726_v60 = vld [vmem:[%s3632_s18 + $0x60] sm:$0xff]  ;;  %v3408_v14 = vmov 4   ;;  %v3412_v41 = vmov 7  }
  0x6f   : > { %v3677_v43 = vld [vmem:[%s3632_s18 + $0x38] sm:$0xff]  ;;  %v3690_v51 = vld [vmem:[%s3632_s18 + $0x30] sm:$0xff]  ;;  %v3730_v61 = vld [vmem:[%s3632_s18 + $0xa0] sm:$0xff]  ;;  %3162 = vset.pattern.permute.xlu2 %v3408_v14 }
  0x70   : > { %645 = vmatpush.bf16.msra.mxu2 %v3031_v16  ;;  %v3680_v45 = vld [vmem:[%s3632_s18 + $0x78] sm:$0xff]  ;;  %v3694_v52 = vld [vmem:[%s3632_s18 + $0x70] sm:$0xff]  ;;  %v3735_v62 = vld [vmem:[%s3632_s18 + $0xe0] sm:$0xff]  ;;  %1738 = vperm.xlu2 %3162, %v3638_v2  }
  0x71   : > { %658 = vmatpush.bf16.msra.mxu3 %v3039_v17  ;;  %619 = vmatpush.bf16.msra.mxu0 %v3015_v18  ;;  %v3683_v49 = vld [vmem:[%s3632_s18 + $0xb8] sm:$0xff]  ;;  %v3698_v53 = vld [vmem:[%s3632_s18 + $0xb0] sm:$0xff]  ;;  %v3770_v8 = vld [vmem:[%s3632_s18 + $0x8] sm:$0xff]  ;;  %v873_v17 = vlaneseq }
  0x72   : > { %632 = vmatpush.bf16.msra.mxu1 %v3023_v19  ;;  %v3687_v50 = vld [vmem:[%s3632_s18 + $0xf8] sm:$0xff]  ;;  %v3703_v54 = vld [vmem:[%s3632_s18 + $0xf0] sm:$0xff]  ;;  %v3774_v9 = vld [vmem:[%s3632_s18 + $0x48] sm:$0xff] }
  0x73   : > { %v3738_v63 = vld [vmem:[%s3632_s18 + $0x18] sm:$0xff]  ;;  %v3754_v4 = vld [vmem:[%s3632_s18 + $0x10] sm:$0xff]  ;;  %v3778_v10 = vld [vmem:[%s3632_s18 + $0x88] sm:$0xff]  ;;  %v3837_v18 = vand.u32 127, %v873_v17 }
  0x74   : > { %646 = vmatpush.bf16.msra.mxu2 %v3030_v20  ;;  %v3742_v0 = vld [vmem:[%s3632_s18 + $0x58] sm:$0xff]  ;;  %v3758_v5 = vld [vmem:[%s3632_s18 + $0x50] sm:$0xff]  ;;  %v3783_v11 = vld [vmem:[%s3632_s18 + $0xc8] sm:$0xff]  ;;  %3166 = vset.pattern.permute.xlu0 %v3412_v41 }
  0x75   : > { %659 = vmatpush.bf16.msra.mxu3 %v3038_v21  ;;  %620 = vmatpush.bf16.msra.mxu0 %v3014_v22  ;;  %v3746_v1 = vld [vmem:[%s3632_s18 + $0x98] sm:$0xff]  ;;  %v3762_v6 = vld [vmem:[%s3632_s18 + $0x90] sm:$0xff]  ;;  %v3786_v12 = vld [vmem:[%s3632_s18] sm:$0xff]  ;;  %v3840_v19 = vadd.s32 128, %v3837_v18  ;;  %v3843_v20 = vadd.s32 256, %v3837_v18  ;;  %v3846_v21 = vadd.s32 384, %v3837_v18 }
  0x76   : > { %633 = vmatpush.bf16.msra.mxu1 %v3022_v23  ;;  %v3751_v3 = vld [vmem:[%s3632_s18 + $0xd8] sm:$0xff]  ;;  %v3767_v7 = vld [vmem:[%s3632_s18 + $0xd0] sm:$0xff]  ;;  %v3790_v13 = vld [vmem:[%s3632_s18 + $0x40] sm:$0xff]  ;;  %v3409_v23 = vmov 1.0|1.0   ;;  %3164 = vset.pattern.permute.xlu1 %v3410_v24 }
  0x77   : > { %v3794_v15 = vld [vmem:[%s3632_s18 + $0x80] sm:$0xff]  ;;  %2071 = vperm.xlu1 %3164, %v3638_v2  }
  0x78   : > { %647 = vmatpush.bf16.msra.mxu2 %v3029_v25  ;;  %v3800_v16 = vld [vmem:[%s3632_s18 + $0xc0] sm:$0xff]  ;;  %v3411_v25 = vmov 5  }
  0x79   : > { %660 = vmatpush.bf16.msra.mxu3 %v3037_v26  ;;  %621 = vmatpush.bf16.msra.mxu0 %v3013_v27 }
  0x7a   : > { %634 = vmatpush.bf16.msra.mxu1 %v3021_v28  ;;  %3163 = vset.pattern.permute.xlu2 %v3411_v25 }
  0x7b   : > { %1904 = vperm.xlu2 %3163, %v3638_v2  }
  0x7c   : > { %648 = vmatpush.bf16.msra.mxu2 %v3028_v29 }
  0x7d   : > { %661 = vmatpush.bf16.msra.mxu3 %v3036_v31  ;;  %622 = vmatpush.bf16.msra.mxu0 %v3012_v32 }
  0x7e   : > { %635 = vmatpush.bf16.msra.mxu1 %v3020_v34 }
  0x80   : > { %649 = vmatpush.bf16.msra.mxu2 %v3027_v36 }
  0x81   : > { %662 = vmatpush.bf16.msra.mxu3 %v3035_v39  ;;  %623 = vmatpush.bf16.msra.mxu0 %v3011_v40 }
  0x82   : > { %636 = vmatpush.bf16.msra.mxu1 %v3019_v42  ;;  %v2235_v42 = vld [vmem:[#allocation7] sm:$0xff] }
  0x83   : > { %650 = vmatmul.bf16.vlgmr.msra.gmra.mxu2 %v418_v44  ;;  %3165 = vset.pattern.permute.xlu2 %v3412_v41 }
  0x84   : > { %663 = vmatmul.bf16.vlgmr.msra.gmra.mxu3 %v419_v46  ;;  %624 = vmatmul.bf16.vlgmr.msra.gmra.mxu0 %v416_v47 }
  0x85   : > { %1086 = vmatpush.bf16.msrb.mxu0 %v3677_v43  ;;  %637 = vmatmul.bf16.vlgmr.msra.gmra.mxu1 %v417_v48 }
  0x86   : > { %1099 = vmatpush.bf16.msrb.mxu1 %v3680_v45  ;;  %1112 = vmatpush.bf16.msrb.mxu2 %v3683_v49 }
  0x87   : > { %1125 = vmatpush.bf16.msrb.mxu3 %v3687_v50  ;;  %2237 = vperm.xlu2 %3165, %v2235_v42   ;;  %v697_v42 = vld [vmem:[%s3626_s13] sm:$0x1] }
  0x89   : > { %1087 = vmatpush.bf16.msrb.mxu0 %v3690_v51 }
  0x8a   : > { %1100 = vmatpush.bf16.msrb.mxu1 %v3694_v52  ;;  %1113 = vmatpush.bf16.msrb.mxu2 %v3698_v53 }
  0x8b   : > { %1126 = vmatpush.bf16.msrb.mxu3 %v3703_v54 }
  0x8d   : > { %1088 = vmatpush.bf16.msrb.mxu0 %v3706_v55 }
  0x8e   : > { %1101 = vmatpush.bf16.msrb.mxu1 %v3710_v56  ;;  %1114 = vmatpush.bf16.msrb.mxu2 %v3714_v57 }
  0x8f   : > { %1127 = vmatpush.bf16.msrb.mxu3 %v3719_v58 }
  0x91   : > { %1089 = vmatpush.bf16.msrb.mxu0 %v3722_v59 }
  0x92   : > { %1102 = vmatpush.bf16.msrb.mxu1 %v3726_v60  ;;  %1115 = vmatpush.bf16.msrb.mxu2 %v3730_v61 }
  0x93   : > { %1128 = vmatpush.bf16.msrb.mxu3 %v3735_v62 }
  0x95   : > { %1090 = vmatpush.bf16.msrb.mxu0 %v3738_v63 }
  0x96   : > { %1103 = vmatpush.bf16.msrb.mxu1 %v3742_v0  ;;  %1116 = vmatpush.bf16.msrb.mxu2 %v3746_v1 }
  0x97   : > { %1129 = vmatpush.bf16.msrb.mxu3 %v3751_v3 }
  0x99   : > { %1091 = vmatpush.bf16.msrb.mxu0 %v3754_v4 }
  0x9a   : > { %1104 = vmatpush.bf16.msrb.mxu1 %v3758_v5  ;;  %1117 = vmatpush.bf16.msrb.mxu2 %v3762_v6 }
  0x9b   : > { %1130 = vmatpush.bf16.msrb.mxu3 %v3767_v7 }
  0x9d   : > { %1092 = vmatpush.bf16.msrb.mxu0 %v3770_v8 }
  0x9e   : > { %1105 = vmatpush.bf16.msrb.mxu1 %v3774_v9  ;;  %1118 = vmatpush.bf16.msrb.mxu2 %v3778_v10 }
  0x9f   : > { %1131 = vmatpush.bf16.msrb.mxu3 %v3783_v11 }
  0xa1   : > { %1093 = vmatpush.bf16.msrb.mxu0 %v3786_v12 }
  0xa2   : > { %1106 = vmatpush.bf16.msrb.mxu1 %v3790_v13  ;;  %1119 = vmatpush.bf16.msrb.mxu2 %v3794_v15 }
  0xa3   : > { %1132 = vmatpush.bf16.msrb.mxu3 %v3800_v16 }
  0xa5   : > { %1252 = vmatpush.bf16.msra.mxu0 %v3677_v43 }
  0xa6   : > { %1265 = vmatpush.bf16.msra.mxu1 %v3680_v45  ;;  %1278 = vmatpush.bf16.msra.mxu2 %v3683_v49 }
  0xa7   : > { %1291 = vmatpush.bf16.msra.mxu3 %v3687_v50 }
  0xa9   : > { %1253 = vmatpush.bf16.msra.mxu0 %v3690_v51 }
  0xaa   : > { %1266 = vmatpush.bf16.msra.mxu1 %v3694_v52  ;;  %1279 = vmatpush.bf16.msra.mxu2 %v3698_v53 }
  0xab   : > { %1292 = vmatpush.bf16.msra.mxu3 %v3703_v54 }
  0xad   : > { %1254 = vmatpush.bf16.msra.mxu0 %v3706_v55 }
  0xae   : > { %1267 = vmatpush.bf16.msra.mxu1 %v3710_v56  ;;  %1280 = vmatpush.bf16.msra.mxu2 %v3714_v57 }
  0xaf   : > { %1293 = vmatpush.bf16.msra.mxu3 %v3719_v58 }
  0xb1   : > { %1255 = vmatpush.bf16.msra.mxu0 %v3722_v59 }
  0xb2   : > { %1268 = vmatpush.bf16.msra.mxu1 %v3726_v60  ;;  %1281 = vmatpush.bf16.msra.mxu2 %v3730_v61 }
  0xb3   : > { %1294 = vmatpush.bf16.msra.mxu3 %v3735_v62 }
  0xb5   : > { %1256 = vmatpush.bf16.msra.mxu0 %v3738_v63 }
  0xb6   : > { %1269 = vmatpush.bf16.msra.mxu1 %v3742_v0  ;;  %1282 = vmatpush.bf16.msra.mxu2 %v3746_v1 }
  0xb7   : > { %1295 = vmatpush.bf16.msra.mxu3 %v3751_v3 }
  0xb9   : > { %1257 = vmatpush.bf16.msra.mxu0 %v3754_v4 }
  0xba   : > { %1270 = vmatpush.bf16.msra.mxu1 %v3758_v5  ;;  %1283 = vmatpush.bf16.msra.mxu2 %v3762_v6 }
  0xbb   : > { %1296 = vmatpush.bf16.msra.mxu3 %v3767_v7 }
  0xbd   : > { %1258 = vmatpush.bf16.msra.mxu0 %v3770_v8 }
  0xbe   : > { %1271 = vmatpush.bf16.msra.mxu1 %v3774_v9  ;;  %1284 = vmatpush.bf16.msra.mxu2 %v3778_v10 }
  0xbf   : > { %1297 = vmatpush.bf16.msra.mxu3 %v3783_v11 }
  0xc1   : > { %1259 = vmatpush.bf16.msra.mxu0 %v3786_v12 }
  0xc2   : > { %1272 = vmatpush.bf16.msra.mxu1 %v3790_v13  ;;  %1285 = vmatpush.bf16.msra.mxu2 %v3794_v15 }
  0xc3   : > { %1298 = vmatpush.bf16.msra.mxu3 %v3800_v16 }
  0xd5   : > { %v881_v22 = vpop.permute.xlu0 %880  ;;  %v1406_v2 = vpop.permute.xlu1 %1405 }
  0xd6   : > { %vm882_vm0 = vcmp.eq.s32.totalorder %v3837_v18, %v881_v22  ;;  %vm883_vm1 = vcmp.eq.s32.totalorder %v3840_v19, %v881_v22  ;;  %vm884_vm2 = vcmp.eq.s32.totalorder %v3843_v20, %v881_v22  ;;  %vm885_vm4 = vcmp.eq.s32.totalorder %v3846_v21, %v881_v22 }
  0xd7   : > { %vm2911_vm3 = vmpackc.low %vm882_vm0, %vm882_vm0  ;;  %vm1407_vm0 = vcmp.eq.s32.totalorder %v3837_v18, %v1406_v2 }
  0xd8   : > { %2912 = vmatmul.msk.bf16.vlgmr.msrb.gmra.mxu0 %vm2911_vm3, %v3409_v23  ;;  %vm2913_vm5 = vmpackc.low %vm883_vm1, %vm883_vm1  ;;  %vm1409_vm1 = vcmp.eq.s32.totalorder %v3843_v20, %v1406_v2  ;;  %vm1408_vm3 = vcmp.eq.s32.totalorder %v3840_v19, %v1406_v2 }
  0xd9   : > { %2914 = vmatmul.msk.bf16.vlgmr.msrb.gmra.mxu1 %vm2913_vm5, %v3409_v23  ;;  %vm2915_vm6 = vmpackc.low %vm884_vm2, %vm884_vm2  ;;  %1419 = vmatpush.bf16.msrb.mxu0 %v3677_v43  ;;  %vm1410_vm2 = vcmp.eq.s32.totalorder %v3846_v21, %v1406_v2 }
  0xda   : > { %2916 = vmatmul.msk.bf16.vlgmr.msrb.gmra.mxu2 %vm2915_vm6, %v3409_v23  ;;  %vm2917_vm7 = vmpackc.low %vm885_vm4, %vm885_vm4  ;;  %1432 = vmatpush.bf16.msrb.mxu1 %v3680_v45 }
  0xdb   : > { %2918 = vmatmul.msk.bf16.vlgmr.msrb.gmra.mxu3 %vm2917_vm7, %v3409_v23  ;;  %1445 = vmatpush.bf16.msrb.mxu2 %v3683_v49  ;;  %vm2935_vm4 = vmpackc.low %vm1407_vm0, %vm1407_vm0 }
  0xdc   : > { %1458 = vmatpush.bf16.msrb.mxu3 %v3687_v50  ;;  %vm2939_vm5 = vmpackc.low %vm1409_vm1, %vm1409_vm1 }
  0xdd   : > { %1420 = vmatpush.bf16.msrb.mxu0 %v3690_v51  ;;  %vm2941_vm6 = vmpackc.low %vm1410_vm2, %vm1410_vm2 }
  0xde   : > { %1433 = vmatpush.bf16.msrb.mxu1 %v3694_v52  ;;  %v1239_v26 = vpop.permute.xlu0 %1238  ;;  %vm2937_vm7 = vmpackc.low %vm1408_vm3, %vm1408_vm3 }
  0xdf   : > { %1446 = vmatpush.bf16.msrb.mxu2 %v3698_v53  ;;  %vm1240_vm8 = vcmp.eq.s32.totalorder %v3837_v18, %v1239_v26  ;;  %vm1241_vm9 = vcmp.eq.s32.totalorder %v3840_v19, %v1239_v26  ;;  %vm1242_vm10 = vcmp.eq.s32.totalorder %v3843_v20, %v1239_v26  ;;  %vm1243_vm11 = vcmp.eq.s32.totalorder %v3846_v21, %v1239_v26 }
  0xe0   : > { %1459 = vmatpush.bf16.msrb.mxu3 %v3703_v54  ;;  %vm2923_vm12 = vmpackc.low %vm1240_vm8, %vm1240_vm8  ;;  %v1572_v40 = vpop.permute.xlu1 %1571 }
  0xe1   : > { %1421 = vmatpush.bf16.msrb.mxu0 %v3706_v55  ;;  %vm2925_vm13 = vmpackc.low %vm1241_vm9, %vm1241_vm9  ;;  %vm1573_vm8 = vcmp.eq.s32.totalorder %v3837_v18, %v1572_v40  ;;  %vm1575_vm9 = vcmp.eq.s32.totalorder %v3843_v20, %v1572_v40 }
  0xe2   : > { %1434 = vmatpush.bf16.msrb.mxu1 %v3710_v56  ;;  %vm2927_vm14 = vmpackc.low %vm1242_vm10, %vm1242_vm10  ;;  %vm1576_vm10 = vcmp.eq.s32.totalorder %v3846_v21, %v1572_v40 }
  0xe3   : > { %1447 = vmatpush.bf16.msrb.mxu2 %v3714_v57  ;;  %vm2929_vm15 = vmpackc.low %vm1243_vm11, %vm1243_vm11  ;;  %vm1574_vm11 = vcmp.eq.s32.totalorder %v3840_v19, %v1572_v40 }
  0xe4   : > { %1460 = vmatpush.bf16.msrb.mxu3 %v3719_v58 }
  0xe5   : > { %1422 = vmatpush.bf16.msrb.mxu0 %v3722_v59 }
  0xe6   : > { %1435 = vmatpush.bf16.msrb.mxu1 %v3726_v60 }
  0xe7   : > { %1448 = vmatpush.bf16.msrb.mxu2 %v3730_v61 }
  0xe8   : > { %1461 = vmatpush.bf16.msrb.mxu3 %v3735_v62  ;;  %2924 = vmatmul.msk.bf16.vlgmr.msra.gmra.mxu0 %vm2923_vm12, %v3409_v23  ;;  %vm2947_vm12 = vmpackc.low %vm1573_vm8, %vm1573_vm8 }
  0xe9   : > { %1423 = vmatpush.bf16.msrb.mxu0 %v3738_v63  ;;  %2926 = vmatmul.msk.bf16.vlgmr.msra.gmra.mxu1 %vm2925_vm13, %v3409_v23  ;;  %vm2951_vm13 = vmpackc.low %vm1575_vm9, %vm1575_vm9 }
  0xea   : > { %2928 = vmatmul.msk.bf16.vlgmr.msra.gmra.mxu2 %vm2927_vm14, %v3409_v23  ;;  %1436 = vmatpush.bf16.msrb.mxu1 %v3742_v0  ;;  %vm2953_vm14 = vmpackc.low %vm1576_vm10, %vm1576_vm10 }
  0xeb   : > { %1449 = vmatpush.bf16.msrb.mxu2 %v3746_v1  ;;  %2930 = vmatmul.msk.bf16.vlgmr.msra.gmra.mxu3 %vm2929_vm15, %v3409_v23  ;;  %vm2949_vm15 = vmpackc.low %vm1574_vm11, %vm1574_vm11  ;;  %vm709_vm11 = vcmask 1040384  }
  0xec   : > { %1462 = vmatpush.bf16.msrb.mxu3 %v3751_v3 }
  0xed   : > { %1424 = vmatpush.bf16.msrb.mxu0 %v3754_v4 }
  0xee   : > { %1437 = vmatpush.bf16.msrb.mxu1 %v3758_v5 }
  0xef   : > { %1450 = vmatpush.bf16.msrb.mxu2 %v3762_v6 }
  0xf0   : > { %1463 = vmatpush.bf16.msrb.mxu3 %v3767_v7 }
  0xf1   : > { %1425 = vmatpush.bf16.msrb.mxu0 %v3770_v8 }
  0xf2   : > { %1438 = vmatpush.bf16.msrb.mxu1 %v3774_v9 }
  0xf3   : > { %1451 = vmatpush.bf16.msrb.mxu2 %v3778_v10 }
  0xf4   : > { %1464 = vmatpush.bf16.msrb.mxu3 %v3783_v11 }
  0xf5   : > { %1426 = vmatpush.bf16.msrb.mxu0 %v3786_v12 }
  0xf6   : > { %1439 = vmatpush.bf16.msrb.mxu1 %v3790_v13 }
  0xf7   : > { %1452 = vmatpush.bf16.msrb.mxu2 %v3794_v15 }
  0xf8   : > { %1465 = vmatpush.bf16.msrb.mxu3 %v3800_v16  ;;  %2936 = vmatmul.msk.bf16.vlgmr.msrb.gmra.mxu0 %vm2935_vm4, %v3409_v23 }
  0xf9   : > { %1585 = vmatpush.bf16.msra.mxu0 %v3677_v43  ;;  %2938 = vmatmul.msk.bf16.vlgmr.msrb.gmra.mxu1 %vm2937_vm7, %v3409_v23 }
  0xfa   : > { %1598 = vmatpush.bf16.msra.mxu1 %v3680_v45  ;;  %2940 = vmatmul.msk.bf16.vlgmr.msrb.gmra.mxu2 %vm2939_vm5, %v3409_v23 }
  0xfb   : > { %1611 = vmatpush.bf16.msra.mxu2 %v3683_v49  ;;  %2942 = vmatmul.msk.bf16.vlgmr.msrb.gmra.mxu3 %vm2941_vm6, %v3409_v23 }
  0xfc   : > { %1624 = vmatpush.bf16.msra.mxu3 %v3687_v50 }
  0xfd   : > { %1586 = vmatpush.bf16.msra.mxu0 %v3690_v51 }
  0xfe   : > { %1599 = vmatpush.bf16.msra.mxu1 %v3694_v52 }
  0xff   : > { %1612 = vmatpush.bf16.msra.mxu2 %v3698_v53 }
 0x100   : > { %1625 = vmatpush.bf16.msra.mxu3 %v3703_v54 }
 0x101   : > { %1587 = vmatpush.bf16.msra.mxu0 %v3706_v55  ;;  %v625_v27 = vpop.f32.mrf.mxu0 }
 0x102   : > { %1600 = vmatpush.bf16.msra.mxu1 %v3710_v56  ;;  %v638_v28 = vpop.f32.mrf.mxu1 }
 0x103   : > { %1613 = vmatpush.bf16.msra.mxu2 %v3714_v57  ;;  %v639_v29 = vadd.f32 %v638_v28, %v625_v27 }
 0x104   : > { %1626 = vmatpush.bf16.msra.mxu3 %v3719_v58 }
 0x105   : > { %1588 = vmatpush.bf16.msra.mxu0 %v3722_v59 }
 0x106   : > { %1601 = vmatpush.bf16.msra.mxu1 %v3726_v60  ;;  %v651_v30 = vpop.f32.mrf.mxu2 }
 0x107   : > { %1614 = vmatpush.bf16.msra.mxu2 %v3730_v61  ;;  %v652_v31 = vadd.f32 %v651_v30, %v639_v29  ;;  %v664_v32 = vpop.f32.mrf.mxu3 }
 0x108   : > { %1627 = vmatpush.bf16.msra.mxu3 %v3735_v62 }
 0x109   : > { %1589 = vmatpush.bf16.msra.mxu0 %v3738_v63  ;;  %v3926_v33 = vadd.f32 %v664_v32, %v652_v31  ;;  %v627_v34 = vpop.f32.mrf.mxu0 }
 0x10a   : > { %1602 = vmatpush.bf16.msra.mxu1 %v3742_v0  ;;  %v640_v35 = vpop.f32.mrf.mxu1 }
 0x10b   : > { %1615 = vmatpush.bf16.msra.mxu2 %v3746_v1  ;;  %v668_v36 = vrot.slane %v3926_v33, 4  ;;  %v675_v37 = vmul.f32 %v3926_v33, %v3926_v33 }
 0x10c   : > { %1628 = vmatpush.bf16.msra.mxu3 %v3751_v3 }
 0x10d   : > { %1590 = vmatpush.bf16.msra.mxu0 %v3754_v4  ;;  %v669_v38 = vadd.f32 %v668_v36, %v3926_v33  ;;  %v676_v39 = vrot.slane %v675_v37, 4 }
 0x10e   : > { %1603 = vmatpush.bf16.msra.mxu1 %v3758_v5  ;;  %v653_v44 = vpop.f32.mrf.mxu2 }
 0x10f   : > { %1616 = vmatpush.bf16.msra.mxu2 %v3762_v6  ;;  %v670_v46 = vrot.slane %v669_v38, 2  ;;  %v677_v47 = vadd.f32 %v676_v39, %v675_v37  ;;  %v666_v48 = vpop.f32.mrf.mxu3  ;;  %v1739_v37 = vpop.permute.xlu2 %1738 }
 0x110   : > { %1629 = vmatpush.bf16.msra.mxu3 %v3767_v7  ;;  %vm1740_vm2 = vcmp.eq.s32.totalorder %v3837_v18, %v1739_v37  ;;  %vm1742_vm3 = vcmp.eq.s32.totalorder %v3843_v20, %v1739_v37  ;;  %vm1743_vm5 = vcmp.eq.s32.totalorder %v3846_v21, %v1739_v37  ;;  %vm1741_vm6 = vcmp.eq.s32.totalorder %v3840_v19, %v1739_v37 }
 0x111   : > { %1591 = vmatpush.bf16.msra.mxu0 %v3770_v8  ;;  %v671_v14 = vadd.f32 %v670_v46, %v669_v38  ;;  %v678_v17 = vrot.slane %v677_v47, 2  ;;  %vm2959_vm7 = vmpackc.low %vm1740_vm2, %vm1740_vm2 }
 0x112   : > { %1604 = vmatpush.bf16.msra.mxu1 %v3774_v9  ;;  %vm2963_vm8 = vmpackc.low %vm1742_vm3, %vm1742_vm3 }
 0x113   : > { %1617 = vmatpush.bf16.msra.mxu2 %v3778_v10  ;;  %v672_v22 = vrot.slane %v671_v14, 1  ;;  %v679_v24 = vadd.f32 %v678_v17, %v677_v47  ;;  %vm2965_vm9 = vmpackc.low %vm1743_vm5, %vm1743_vm5  ;;  %v698_v47 = vld [vmem:[%s3626_s13 + $0x1] sm:$0x1] }
 0x114   : > { %1630 = vmatpush.bf16.msra.mxu3 %v3783_v11  ;;  %vm2961_vm10 = vmpackc.low %vm1741_vm6, %vm1741_vm6 }
 0x115   : > { %1592 = vmatpush.bf16.msra.mxu0 %v3786_v12  ;;  %v673_v25 = vadd.f32 %v672_v22, %v671_v14  ;;  %v680_v26 = vrot.slane %v679_v24, 1 }
 0x116   : > { %1605 = vmatpush.bf16.msra.mxu1 %v3790_v13 }
 0x117   : > { %1618 = vmatpush.bf16.msra.mxu2 %v3794_v15  ;;  %v3953_v2 = vmul.f32 0.125, %v673_v25  ;;  %v681_v27 = vadd.f32 %v680_v26, %v679_v24  ;;  %v3413_v26 = vmov 286326784  }
 0x118   : > { %1631 = vmatpush.bf16.msra.mxu3 %v3800_v16  ;;  %2948 = vmatmul.msk.bf16.vlgmr.msra.gmra.mxu0 %vm2947_vm12, %v3409_v23  ;;  %vm714_vm12 = vcmask 1041409  }
 0x119   : > { %1752 = vmatpush.bf16.msrb.mxu0 %v3677_v43  ;;  %v682_v28 = vmul.f32 0.125, %v681_v27  ;;  %v683_v29 = vmul.f32 %v3953_v2, %v3953_v2  ;;  %2950 = vmatmul.msk.bf16.vlgmr.msra.gmra.mxu1 %vm2949_vm15, %v3409_v23  ;;  %vm783_vm15 = vsmask.f32 256 }
 0x11a   : > { %1765 = vmatpush.bf16.msrb.mxu1 %v3680_v45  ;;  %2952 = vmatmul.msk.bf16.vlgmr.msra.gmra.mxu2 %vm2951_vm13, %v3409_v23  ;;  %vm718_vm13 = vcmask 1042434  }
 0x11b   : > { %1778 = vmatpush.bf16.msrb.mxu2 %v3683_v49  ;;  %2954 = vmatmul.msk.bf16.vlgmr.msra.gmra.mxu3 %vm2953_vm14, %v3409_v23  ;;  %v684_v30 = vsub.f32 %v682_v28, %v683_v29  ;;  %vm722_vm14 = vcmask 1043459  }
 0x11c   : > { %1791 = vmatpush.bf16.msrb.mxu3 %v3687_v50 }
 0x11d   : > { %1753 = vmatpush.bf16.msrb.mxu0 %v3690_v51  ;;  %v685_v31 = vmax.f32 %v684_v30, 0.0 }
 0x11e   : > { %1766 = vmatpush.bf16.msrb.mxu1 %v3694_v52 }
 0x11f   : > { %1779 = vmatpush.bf16.msrb.mxu2 %v3698_v53  ;;  %v686_v32 = vadd.f32 1e-05, %v685_v31 }
 0x120   : > { %1792 = vmatpush.bf16.msrb.mxu3 %v3703_v54 }
 0x121   : > { %1754 = vmatpush.bf16.msrb.mxu0 %v3706_v55  ;;  %3167 = vrsqrt.f32 %v686_v32  ;;  %vm693_vm0 = vweird.f32 %v686_v32 }
 0x122   : > { %1767 = vmatpush.bf16.msrb.mxu1 %v3710_v56 }
 0x123   : > { %1780 = vmatpush.bf16.msrb.mxu2 %v3714_v57 }
 0x124   : > { %1793 = vmatpush.bf16.msrb.mxu3 %v3719_v58 }
 0x125   : > { %1755 = vmatpush.bf16.msrb.mxu0 %v3722_v59 }
 0x126   : > { %1768 = vmatpush.bf16.msrb.mxu1 %v3726_v60 }
 0x127   : > { %1781 = vmatpush.bf16.msrb.mxu2 %v3730_v61  ;;  %v3168_v34 = vpop.eup %3167 }
 0x128   : > { %1794 = vmatpush.bf16.msrb.mxu3 %v3735_v62  ;;  %v688_v35 = vmul.f32 %v3168_v34, %v686_v32  ;;  %vm694_vm1 = vweird.f32 %v3168_v34 }
 0x129   : > { %1756 = vmatpush.bf16.msrb.mxu0 %v3738_v63  ;;  %vm3986_vm4 = vmor %vm693_vm0, %vm694_vm1 }
 0x12a   : > { %1769 = vmatpush.bf16.msrb.mxu1 %v3742_v0  ;;  %v689_v36 = vmul.f32 %v3168_v34, %v688_v35  ;;  %vm4035_vm0 = vmand %vm709_vm11, %vm783_vm15 }
 0x12b   : > { %1782 = vmatpush.bf16.msrb.mxu2 %v3746_v1 }
 0x12c   : > { %1795 = vmatpush.bf16.msrb.mxu3 %v3751_v3  ;;  %v690_v38 = vmul.f32 0.5, %v689_v36 }
 0x12d   : > { %1757 = vmatpush.bf16.msrb.mxu0 %v3754_v4 }
 0x12e   : > { %1770 = vmatpush.bf16.msrb.mxu1 %v3758_v5  ;;  %v691_v39 = vsub.f32 1.5, %v690_v38 }
 0x12f   : > { %1783 = vmatpush.bf16.msrb.mxu2 %v3762_v6 }
 0x130   : > { %1796 = vmatpush.bf16.msrb.mxu3 %v3767_v7  ;;  %v692_v41 = vmul.f32 %v3168_v34, %v691_v39 }
 0x131   : > { %1758 = vmatpush.bf16.msrb.mxu0 %v3770_v8 }
 0x132   : > { %1771 = vmatpush.bf16.msrb.mxu1 %v3774_v9  ;;  %v696_v44 = vsel %vm3986_vm4, %v3168_v34, %v692_v41 }
 0x133   : > { %1784 = vmatpush.bf16.msrb.mxu2 %v3778_v10  ;;  %v699_v46 = vmul.f32 %v697_v42, %v696_v44 }
 0x134   : > { %1797 = vmatpush.bf16.msrb.mxu3 %v3783_v11 }
 0x135   : > { %1759 = vmatpush.bf16.msrb.mxu0 %v3786_v12  ;;  %v700_v48 = vmul.f32 %v699_v46, %v3953_v2  ;;  %v702_v14 = vperm.slane %v699_v46, 0  ;;  %v743_v2 = vunpack.c.l.s4 %v3413_v26  ;;  %v785_v46 = vld [vmem:[%s4039_s6] sm:$0x1] }
 0x136   : > { %1772 = vmatpush.bf16.msrb.mxu1 %v3790_v13 }
 0x137   : > { %1785 = vmatpush.bf16.msrb.mxu2 %v3794_v15  ;;  %v701_v17 = vsub.f32 %v698_v47, %v700_v48  ;;  %v703_v22 = vmul.f32 %v702_v14, %v3926_v33  ;;  %v4023_v28 = vunpack.c.0.s8 %v743_v2 }
 0x138   : > { %1798 = vmatpush.bf16.msrb.mxu3 %v3800_v16  ;;  %2960 = vmatmul.msk.bf16.vlgmr.msrb.gmra.mxu0 %vm2959_vm7, %v3409_v23 }
 0x139   : > { %1918 = vmatpush.bf16.msra.mxu0 %v3677_v43  ;;  %2962 = vmatmul.msk.bf16.vlgmr.msrb.gmra.mxu1 %vm2961_vm10, %v3409_v23  ;;  %v704_v24 = vperm.slane %v701_v17, 0 }
 0x13a   : > { %1931 = vmatpush.bf16.msra.mxu1 %v3680_v45  ;;  %2964 = vmatmul.msk.bf16.vlgmr.msrb.gmra.mxu2 %vm2963_vm8, %v3409_v23 }
 0x13b   : > { %1944 = vmatpush.bf16.msra.mxu2 %v3683_v49  ;;  %2966 = vmatmul.msk.bf16.vlgmr.msrb.gmra.mxu3 %vm2965_vm9, %v3409_v23  ;;  %v705_v25 = vadd.f32 %v704_v24, %v703_v22  ;;  %v788_v22 = vld [vmem:[%s4039_s6 + $0x8] sm:$0x1]  ;;  %vm1210_vm9 = vsmask.f32 7938 }
 0x13c   : > { %1957 = vmatpush.bf16.msra.mxu3 %v3687_v50 }
 0x13d   : > { %1919 = vmatpush.bf16.msra.mxu0 %v3690_v51  ;;  %v706_v27 = vpack.c.bf16 %v705_v25, %v705_v25 }
 0x13e   : > { %1932 = vmatpush.bf16.msra.mxu1 %v3694_v52 }
 0x13f   : > { %1945 = vmatpush.bf16.msra.mxu2 %v3698_v53  ;;  %v708_v33 = vrot.slane %v706_v27, 3 }
 0x140   : > { %1958 = vmatpush.bf16.msra.mxu3 %v3703_v54 }
 0x141   : > { %1920 = vmatpush.bf16.msra.mxu0 %v3706_v55  ;;  %v712_v29 = vsel %vm709_vm11, %v706_v27, %v708_v33  ;;  %v715_v30 = vsel %vm714_vm12, %v706_v27, %v708_v33  ;;  %v719_v31 = vsel %vm718_vm13, %v706_v27, %v708_v33  ;;  %v723_v32 = vsel %vm722_vm14, %v706_v27, %v708_v33  ;;  %v791_v27 = vld [vmem:[%s4039_s6 + $0x10] sm:$0x1]  ;;  %v797_v33 = vld [vmem:[%s4039_s6 + $0x20] sm:$0x1] }
 0x142   : > { %1933 = vmatpush.bf16.msra.mxu1 %v3710_v56  ;;  %v717_v34 = vrot.slane %v715_v30, 1  ;;  %v721_v35 = vrot.slane %v719_v31, 2  ;;  %v725_v36 = vrot.slane %v723_v32, 3  ;;  %v727_v37 = vunpack.i.h.s16 %v712_v29 }
 0x143   : > { %1946 = vmatpush.bf16.msra.mxu2 %v3714_v57  ;;  %v2779_v38 = vpack.i.b16 %v712_v29, %v712_v29 }
 0x144   : > { %1959 = vmatpush.bf16.msra.mxu3 %v3719_v58  ;;  %v729_v39 = vunpack.i.h.s16 %v717_v34  ;;  %v731_v40 = vunpack.i.h.s16 %v721_v35  ;;  %v733_v41 = vunpack.i.h.s16 %v725_v36  ;;  %v735_v42 = vpack.i.b16 %v727_v37, %v727_v37 }
 0x145   : > { %1921 = vmatpush.bf16.msra.mxu0 %v3722_v59  ;;  %v2780_v47 = vpack.i.b16 %v717_v34, %v717_v34  ;;  %v2781_v48 = vpack.i.b16 %v721_v35, %v721_v35  ;;  %v2782_v14 = vpack.i.b16 %v725_v36, %v725_v36  ;;  %v745_v17 = vperm.slane %v2779_v38, %v4023_v28  ;;  %v794_v34 = vld [vmem:[%s4039_s6 + $0x18] sm:$0x1]  ;;  %v800_v35 = vld [vmem:[%s4039_s6 + $0x28] sm:$0x1]  ;;  %v1905_v36 = vpop.permute.xlu2 %1904 }
 0x146   : > { %1934 = vmatpush.bf16.msra.mxu1 %v3726_v60  ;;  %v737_v24 = vpack.i.b16 %v729_v39, %v729_v39  ;;  %v739_v25 = vpack.i.b16 %v731_v40, %v731_v40  ;;  %v741_v26 = vpack.i.b16 %v733_v41, %v733_v41  ;;  %v749_v2 = vperm.slane %v735_v42, %v4023_v28  ;;  %v803_v41 = vld [vmem:[%s4039_s6 + $0x30] sm:$0x1] }
 0x147   : > { %1947 = vmatpush.bf16.msra.mxu2 %v3730_v61  ;;  %v753_v29 = vperm.slane %v2780_v47, %v4023_v28  ;;  %v761_v30 = vperm.slane %v2781_v48, %v4023_v28  ;;  %v769_v31 = vperm.slane %v2782_v14, %v4023_v28  ;;  %v786_v32 = vsel %vm4035_vm0, %v745_v17, %v785_v46  ;;  %v806_v47 = vld [vmem:[%s4039_s6 + $0x38] sm:$0x1] }
 0x148   : > { %1960 = vmatpush.bf16.msra.mxu3 %v3735_v62  ;;  %v757_v37 = vperm.slane %v737_v24, %v4023_v28  ;;  %v765_v38 = vperm.slane %v739_v25, %v4023_v28  ;;  %v773_v39 = vperm.slane %v741_v26, %v4023_v28  ;;  %787 = vst [vmem:[%s4039_s6] sm:$0x1] %v786_v32 }
 0x149   : > { %1922 = vmatpush.bf16.msra.mxu0 %v3738_v63  ;;  %v789_v40 = vsel %vm4035_vm0, %v749_v2, %v788_v22  ;;  %v792_v42 = vsel %vm4035_vm0, %v753_v29, %v791_v27  ;;  %v798_v46 = vsel %vm4035_vm0, %v761_v30, %v797_v33  ;;  %vm1908_vm1 = vcmp.eq.s32.totalorder %v3843_v20, %v1905_v36 }
 0x14a   : > { %1935 = vmatpush.bf16.msra.mxu1 %v3742_v0  ;;  %790 = vst [vmem:[%s4039_s6 + $0x8] sm:$0x1] %v789_v40  ;;  %v795_v48 = vsel %vm4035_vm0, %v757_v37, %v794_v34  ;;  %v801_v14 = vsel %vm4035_vm0, %v765_v38, %v800_v35  ;;  %v804_v17 = vsel %vm4035_vm0, %v769_v31, %v803_v41  ;;  %vm2975_vm4 = vmpackc.low %vm1908_vm1, %vm1908_vm1 }
 0x14b   : > { %1948 = vmatpush.bf16.msra.mxu2 %v3746_v1  ;;  %793 = vst [vmem:[%s4039_s6 + $0x10] sm:$0x1] %v792_v42  ;;  %vm1906_vm2 = vcmp.eq.s32.totalorder %v3837_v18, %v1905_v36  ;;  %v807_v22 = vsel %vm4035_vm0, %v773_v39, %v806_v47  ;;  %vm1909_vm3 = vcmp.eq.s32.totalorder %v3846_v21, %v1905_v36 }
 0x14c   : > { %1961 = vmatpush.bf16.msra.mxu3 %v3751_v3  ;;  %796 = vst [vmem:[%s4039_s6 + $0x18] sm:$0x1] %v795_v48  ;;  %vm2971_vm5 = vmpackc.low %vm1906_vm2, %vm1906_vm2  ;;  %vm1907_vm6 = vcmp.eq.s32.totalorder %v3840_v19, %v1905_v36 }
 0x14d   : > { %1923 = vmatpush.bf16.msra.mxu0 %v3754_v4  ;;  %799 = vst [vmem:[%s4039_s6 + $0x20] sm:$0x1] %v798_v46  ;;  %vm2977_vm7 = vmpackc.low %vm1909_vm3, %vm1909_vm3 }
 0x14e   : > { %1936 = vmatpush.bf16.msra.mxu1 %v3758_v5  ;;  %802 = vst [vmem:[%s4039_s6 + $0x28] sm:$0x1] %v801_v14  ;;  %vm2973_vm8 = vmpackc.low %vm1907_vm6, %vm1907_vm6 }
 0x14f   : > { %1949 = vmatpush.bf16.msra.mxu2 %v3762_v6  ;;  %805 = vst [vmem:[%s4039_s6 + $0x30] sm:$0x1] %v804_v17  ;;  %vm4145_vm3 = vmand %vm709_vm11, %vm1210_vm9  ;;  %v1212_v35 = vld [vmem:[%s4039_s6] sm:$0x1] }
 0x150   : > { %1962 = vmatpush.bf16.msra.mxu3 %v3767_v7  ;;  %808 = vst [vmem:[%s4039_s6 + $0x38] sm:$0x1] %v807_v22 }
 0x151   : > { %1924 = vmatpush.bf16.msra.mxu0 %v3770_v8  ;;  %v1215_v39 = vld [vmem:[%s4039_s6 + $0x8] sm:$0x1] }
 0x152   : > { %1937 = vmatpush.bf16.msra.mxu1 %v3774_v9  ;;  %v1218_v47 = vld [vmem:[%s4039_s6 + $0x10] sm:$0x1] }
 0x153   : > { %1950 = vmatpush.bf16.msra.mxu2 %v3778_v10 }
 0x154   : > { %1963 = vmatpush.bf16.msra.mxu3 %v3783_v11  ;;  %v1224_v48 = vld [vmem:[%s4039_s6 + $0x20] sm:$0x1] }
 0x155   : > { %1925 = vmatpush.bf16.msra.mxu0 %v3786_v12 }
 0x156   : > { %1938 = vmatpush.bf16.msra.mxu1 %v3790_v13 }
 0x157   : > { %1951 = vmatpush.bf16.msra.mxu2 %v3794_v15 }
 0x158   : > { %1964 = vmatpush.bf16.msra.mxu3 %v3800_v16  ;;  %2972 = vmatmul.msk.bf16.vlgmr.msra.gmra.mxu0 %vm2971_vm5, %v3409_v23 }
 0x159   : > { %2085 = vmatpush.bf16.msrb.mxu0 %v3677_v43  ;;  %v1095_v43 = vpop.f32.mrf.mxu0  ;;  %2974 = vmatmul.msk.bf16.vlgmr.msra.gmra.mxu1 %vm2973_vm8, %v3409_v23  ;;  %vm1377_vm8 = vsmask.f32 1280 }
 0x15a   : > { %2098 = vmatpush.bf16.msrb.mxu1 %v3680_v45  ;;  %2976 = vmatmul.msk.bf16.vlgmr.msra.gmra.mxu2 %vm2975_vm4, %v3409_v23  ;;  %v1108_v45 = vpop.f32.mrf.mxu1  ;;  %vm4256_vm9 = vmand %vm714_vm12, %vm1377_vm8 }
 0x15b   : > { %2111 = vmatpush.bf16.msrb.mxu2 %v3683_v49  ;;  %2978 = vmatmul.msk.bf16.vlgmr.msra.gmra.mxu3 %vm2977_vm7, %v3409_v23  ;;  %v1109_v49 = vadd.f32 %v1108_v45, %v1095_v43  ;;  %v1221_v43 = vld [vmem:[%s4039_s6 + $0x18] sm:$0x1] }
 0x15c   : > { %2124 = vmatpush.bf16.msrb.mxu3 %v3687_v50 }
 0x15d   : > { %2086 = vmatpush.bf16.msrb.mxu0 %v3690_v51  ;;  %v1121_v50 = vpop.f32.mrf.mxu2 }
 0x15e   : > { %2099 = vmatpush.bf16.msrb.mxu1 %v3694_v52  ;;  %v1122_v52 = vadd.f32 %v1121_v50, %v1109_v49  ;;  %v1227_v49 = vld [vmem:[%s4039_s6 + $0x28] sm:$0x1] }
 0x15f   : > { %2112 = vmatpush.bf16.msrb.mxu2 %v3698_v53  ;;  %v1134_v53 = vpop.f32.mrf.mxu3 }
 0x160   : > { %2125 = vmatpush.bf16.msrb.mxu3 %v3703_v54 }
 0x161   : > { %2087 = vmatpush.bf16.msrb.mxu0 %v3706_v55  ;;  %v1097_v51 = vpop.f32.mrf.mxu0  ;;  %v1135_v55 = vadd.f32 %v1134_v53, %v1122_v52 }
 0x162   : > { %2100 = vmatpush.bf16.msrb.mxu1 %v3710_v56  ;;  %v1110_v54 = vpop.f32.mrf.mxu1  ;;  %v3169_v51 = vld [vmem:[%s3632_s18 + $0x38] sm:$0xff] }
 0x163   : > { %2113 = vmatpush.bf16.msrb.mxu2 %v3714_v57  ;;  %v1138_v56 = vpack.c.bf16 %v1135_v55, %v1135_v55  ;;  %v4122_v57 = vpop.permute.xlu1 %2071 }
 0x164   : > { %2126 = vmatpush.bf16.msrb.mxu3 %v3719_v58  ;;  %vm2073_vm10 = vcmp.eq.s32.totalorder %v3837_v18, %v4122_v57  ;;  %vm2075_vm15 = vcmp.eq.s32.totalorder %v3843_v20, %v4122_v57  ;;  %vm2076_vm1 = vcmp.eq.s32.totalorder %v3846_v21, %v4122_v57  ;;  %vm2074_vm2 = vcmp.eq.s32.totalorder %v3840_v19, %v4122_v57 }
 0x165   : > { %2088 = vmatpush.bf16.msrb.mxu0 %v3722_v59  ;;  %v1140_v58 = vrot.slane %v1138_v56, 3  ;;  %v1123_v59 = vpop.f32.mrf.mxu2  ;;  %vm4164_vm4 = vmpackc.low %vm2075_vm15, %vm2075_vm15  ;;  %vm1543_vm15 = vsmask.f32 7942 }
 0x166   : > { %2101 = vmatpush.bf16.msrb.mxu1 %v3726_v60  ;;  %vm4181_vm5 = vmpackc.low %vm2076_vm1, %vm2076_vm1  ;;  %v3171_v59 = vld [vmem:[%s3632_s18 + $0xb8] sm:$0xff] }
 0x167   : > { %2114 = vmatpush.bf16.msrb.mxu2 %v3730_v61  ;;  %v1143_v61 = vsel %vm709_vm11, %v1138_v56, %v1140_v58  ;;  %vm4196_vm6 = vmpackc.low %vm2073_vm10, %vm2073_vm10 }
 0x168   : > { %2127 = vmatpush.bf16.msrb.mxu3 %v3735_v62  ;;  %v1145_v62 = vsel %vm714_vm12, %v1138_v56, %v1140_v58  ;;  %v2919_v24 = vpack.i.b16 %v1143_v61, %v1143_v61  ;;  %vm4212_vm7 = vmpackc.low %vm2074_vm2, %vm2074_vm2 }
 0x169   : > { %2089 = vmatpush.bf16.msrb.mxu0 %v3738_v63  ;;  %v1261_v60 = vpop.f32.mrf.mxu0  ;;  %v1148_v63 = vsel %vm718_vm13, %v1138_v56, %v1140_v58 }
 0x16a   : > { %2102 = vmatpush.bf16.msrb.mxu1 %v3742_v0  ;;  %v1151_v0 = vsel %vm722_vm14, %v1138_v56, %v1140_v58  ;;  %v1230_v56 = vld [vmem:[%s4039_s6 + $0x30] sm:$0x1]  ;;  %v3170_v58 = vld [vmem:[%s3632_s18 + $0x78] sm:$0xff] }
 0x16b   : > { %2115 = vmatpush.bf16.msrb.mxu2 %v3746_v1  ;;  %v1136_v1 = vpop.f32.mrf.mxu3 }
 0x16c   : > { %2128 = vmatpush.bf16.msrb.mxu3 %v3751_v3  ;;  %v1274_v3 = vpop.f32.mrf.mxu1  ;;  %v3173_v1 = vld [vmem:[%s3632_s18 + $0x30] sm:$0xff] }
 0x16d   : > { %2090 = vmatpush.bf16.msrb.mxu0 %v3754_v4  ;;  %v1147_v4 = vrot.slane %v1145_v62, 1  ;;  %v1275_v25 = vadd.f32 %v1274_v3, %v1261_v60  ;;  %v1287_v14 = vpop.f32.mrf.mxu2  ;;  %v3172_v62 = vld [vmem:[%s3632_s18 + $0xf8] sm:$0xff]  ;;  %v3174_v3 = vld [vmem:[%s3632_s18 + $0x70] sm:$0xff] }
 0x16e   : > { %2103 = vmatpush.bf16.msrb.mxu1 %v3758_v5  ;;  %v1150_v5 = vrot.slane %v1148_v63, 2 }
 0x16f   : > { %2116 = vmatpush.bf16.msrb.mxu2 %v3762_v6  ;;  %v1153_v6 = vrot.slane %v1151_v0, 3  ;;  %v1157_v26 = vunpack.i.h.s16 %v1147_v4  ;;  %v1288_v57 = vadd.f32 %v1287_v14, %v1275_v25  ;;  %v3177_v25 = vld [vmem:[%s3632_s18 + $0x28] sm:$0xff] }
 0x170   : > { %2129 = vmatpush.bf16.msrb.mxu3 %v3767_v7  ;;  %v1155_v7 = vunpack.i.h.s16 %v1143_v61  ;;  %v1159_v2 = vunpack.i.h.s16 %v1150_v5  ;;  %v1233_v61 = vld [vmem:[%s4039_s6 + $0x38] sm:$0x1] }
 0x171   : > { %2091 = vmatpush.bf16.msrb.mxu0 %v3770_v8  ;;  %v1161_v8 = vunpack.i.h.s16 %v1153_v6  ;;  %v2922_v29 = vpack.i.b16 %v1153_v6, %v1153_v6  ;;  %v1165_v30 = vpack.i.b16 %v1157_v26, %v1157_v26  ;;  %v1263_v17 = vpop.f32.mrf.mxu0  ;;  %v3176_v6 = vld [vmem:[%s3632_s18 + $0xf0] sm:$0xff] }
 0x172   : > { %2104 = vmatpush.bf16.msrb.mxu1 %v3774_v9  ;;  %v1163_v27 = vpack.i.b16 %v1155_v7, %v1155_v7  ;;  %v2920_v9 = vpack.i.b16 %v1147_v4, %v1147_v4  ;;  %v1167_v31 = vpack.i.b16 %v1159_v2, %v1159_v2  ;;  %v3175_v4 = vld [vmem:[%s3632_s18 + $0xb0] sm:$0xff] }
 0x173   : > { %2117 = vmatpush.bf16.msrb.mxu2 %v3778_v10  ;;  %v2921_v10 = vpack.i.b16 %v1150_v5, %v1150_v5  ;;  %v1169_v32 = vpack.i.b16 %v1161_v8, %v1161_v8  ;;  %v1197_v38 = vperm.slane %v2922_v29, %v4023_v28  ;;  %v1300_v52 = vpop.f32.mrf.mxu3  ;;  %v3178_v8 = vld [vmem:[%s3632_s18 + $0x68] sm:$0xff] }
 0x174   : > { %2130 = vmatpush.bf16.msrb.mxu3 %v3783_v11  ;;  %v1173_v11 = vperm.slane %v2919_v24, %v4023_v28  ;;  %v1177_v34 = vperm.slane %v1163_v27, %v4023_v28  ;;  %v1181_v36 = vperm.slane %v2920_v9, %v4023_v28  ;;  %v1193_v41 = vperm.slane %v1167_v31, %v4023_v28  ;;  %v1276_v53 = vpop.f32.mrf.mxu1  ;;  %v3179_v27 = vld [vmem:[%s3632_s18 + $0xa8] sm:$0xff] }
 0x175   : > { %2092 = vmatpush.bf16.msrb.mxu0 %v3786_v12  ;;  %v1189_v37 = vperm.slane %v2921_v10, %v4023_v28  ;;  %v1201_v42 = vperm.slane %v1169_v32, %v4023_v28  ;;  %v1231_v60 = vsel %vm4145_vm3, %v1197_v38, %v1230_v56  ;;  %v1301_v0 = vadd.f32 %v1300_v52, %v1288_v57  ;;  %v1289_v7 = vpop.f32.mrf.mxu2  ;;  %v1385_v52 = vld [vmem:[%s4039_s6 + $0x10] sm:$0x2]  ;;  %v1391_v53 = vld [vmem:[%s4039_s6 + $0x20] sm:$0x2] }
 0x176   : > { %2105 = vmatpush.bf16.msrb.mxu1 %v3790_v13  ;;  %v1213_v12 = vsel %vm4145_vm3, %v1173_v11, %v1212_v35  ;;  %v1185_v13 = vperm.slane %v1165_v30, %v4023_v28  ;;  %v1216_v46 = vsel %vm4145_vm3, %v1177_v34, %v1215_v39  ;;  %v1219_v22 = vsel %vm4145_vm3, %v1181_v36, %v1218_v47  ;;  %v3180_v11 = vld [vmem:[%s3632_s18 + $0xe8] sm:$0xff]  ;;  %v3183_v47 = vld [vmem:[%s3632_s18 + $0xa0] sm:$0xff]  ;;  %v1400_v7 = vld [vmem:[%s4039_s6 + $0x38] sm:$0x2] }
 0x177   : > { %2118 = vmatpush.bf16.msrb.mxu2 %v3794_v15  ;;  %1214 = vst [vmem:[%s4039_s6] sm:$0x1] %v1213_v12  ;;  %v1225_v45 = vsel %vm4145_vm3, %v1189_v37, %v1224_v48  ;;  %v1228_v55 = vsel %vm4145_vm3, %v1193_v41, %v1227_v49  ;;  %v1234_v63 = vsel %vm4145_vm3, %v1201_v42, %v1233_v61  ;;  %v3181_v37 = vld [vmem:[%s3632_s18 + $0x20] sm:$0xff]  ;;  %v3185_v61 = vld [vmem:[%s3632_s18 + $0x18] sm:$0xff] }
 0x178   : > { %1217 = vst [vmem:[%s4039_s6 + $0x8] sm:$0x1] %v1216_v46  ;;  %2131 = vmatpush.bf16.msrb.mxu3 %v3800_v16  ;;  %v1222_v54 = vsel %vm4145_vm3, %v1185_v13, %v1221_v43  ;;  %2984 = vmatmul.msk.bf16.vlgmr.msrb.gmra.mxu0 %vm4196_vm6, %v3409_v23  ;;  %v1304_v5 = vpack.c.bf16 %v1301_v0, %v1301_v0  ;;  %v1379_v42 = vld [vmem:[%s4039_s6] sm:$0x2] }
 0x179   : > { %2251 = vmatpush.bf16.msra.mxu0 %v3169_v51  ;;  %1220 = vst [vmem:[%s4039_s6 + $0x10] sm:$0x1] %v1219_v22  ;;  %2986 = vmatmul.msk.bf16.vlgmr.msrb.gmra.mxu1 %vm4212_vm7, %v3409_v23  ;;  %v1428_v2 = vpop.f32.mrf.mxu0  ;;  %v3182_v46 = vld [vmem:[%s3632_s18 + $0x60] sm:$0xff]  ;;  %v1382_v22 = vld [vmem:[%s4039_s6 + $0x8] sm:$0x2] }
 0x17a   : > { %2264 = vmatpush.bf16.msra.mxu1 %v3170_v58  ;;  %1223 = vst [vmem:[%s4039_s6 + $0x18] sm:$0x1] %v1222_v54  ;;  %2988 = vmatmul.msk.bf16.vlgmr.msrb.gmra.mxu2 %vm4164_vm4, %v3409_v23  ;;  %v1306_v24 = vrot.slane %v1304_v5, 3  ;;  %v3184_v43 = vld [vmem:[%s3632_s18 + $0xe0] sm:$0xff]  ;;  %vm4329_vm4 = vmand %vm714_vm12, %vm1543_vm15  ;;  %vm1876_vm15 = vsmask.f32 7946 }
 0x17b   : > { %2277 = vmatpush.bf16.msra.mxu2 %v3171_v59  ;;  %1226 = vst [vmem:[%s4039_s6 + $0x20] sm:$0x1] %v1225_v45  ;;  %2990 = vmatmul.msk.bf16.vlgmr.msrb.gmra.mxu3 %vm4181_vm5, %v3409_v23  ;;  %v1302_v26 = vpop.f32.mrf.mxu3  ;;  %v1388_v59 = vld [vmem:[%s4039_s6 + $0x18] sm:$0x2] }
 0x17c   : > { %2290 = vmatpush.bf16.msra.mxu3 %v3172_v62  ;;  %1229 = vst [vmem:[%s4039_s6 + $0x28] sm:$0x1] %v1228_v55  ;;  %v1309_v33 = vsel %vm709_vm11, %v1304_v5, %v1306_v24  ;;  %v1311_v9 = vsel %vm714_vm12, %v1304_v5, %v1306_v24  ;;  %v1314_v10 = vsel %vm718_vm13, %v1304_v5, %v1306_v24  ;;  %v1441_v35 = vpop.f32.mrf.mxu1 }
 0x17d   : > { %2252 = vmatpush.bf16.msra.mxu0 %v3173_v1  ;;  %1232 = vst [vmem:[%s4039_s6 + $0x30] sm:$0x1] %v1231_v60  ;;  %v1317_v29 = vsel %vm722_vm14, %v1304_v5, %v1306_v24  ;;  %v1313_v30 = vrot.slane %v1311_v9, 1  ;;  %v1316_v31 = vrot.slane %v1314_v10, 2  ;;  %v1321_v34 = vunpack.i.h.s16 %v1309_v33  ;;  %v1454_v54 = vpop.f32.mrf.mxu2  ;;  %v1394_v60 = vld [vmem:[%s4039_s6 + $0x28] sm:$0x2] }
 0x17e   : > { %2265 = vmatpush.bf16.msra.mxu1 %v3174_v3  ;;  %1235 = vst [vmem:[%s4039_s6 + $0x38] sm:$0x1] %v1234_v63  ;;  %v1319_v32 = vrot.slane %v1317_v29, 3  ;;  %v2931_v36 = vpack.i.b16 %v1309_v33, %v1309_v33  ;;  %v1442_v38 = vadd.f32 %v1441_v35, %v1428_v2  ;;  %v3186_v24 = vld [vmem:[%s3632_s18 + $0x58] sm:$0xff]  ;;  %v3189_v10 = vld [vmem:[%s3632_s18 + $0x10] sm:$0xff] }
 0x17f   : > { %2278 = vmatpush.bf16.msra.mxu2 %v3175_v4  ;;  %v1323_v12 = vunpack.i.h.s16 %v1313_v30  ;;  %v1325_v39 = vunpack.i.h.s16 %v1316_v31  ;;  %v1329_v13 = vpack.i.b16 %v1321_v34, %v1321_v34  ;;  %v2932_v48 = vpack.i.b16 %v1313_v30, %v1313_v30  ;;  %v1397_v4 = vld [vmem:[%s4039_s6 + $0x30] sm:$0x2] }
 0x180   : > { %2291 = vmatpush.bf16.msra.mxu3 %v3176_v6  ;;  %v1327_v40 = vunpack.i.h.s16 %v1319_v32  ;;  %v2933_v15 = vpack.i.b16 %v1316_v31, %v1316_v31  ;;  %v2934_v14 = vpack.i.b16 %v1319_v32, %v1319_v32  ;;  %v1339_v17 = vperm.slane %v2931_v36, %v4023_v28  ;;  %v3190_v30 = vld [vmem:[%s3632_s18 + $0x50] sm:$0xff]  ;;  %v2238_v32 = vpop.permute.xlu2 %2237 }
 0x181   : > { %2253 = vmatpush.bf16.msra.mxu0 %v3177_v25  ;;  %v1331_v45 = vpack.i.b16 %v1323_v12, %v1323_v12  ;;  %v1333_v49 = vpack.i.b16 %v1325_v39, %v1325_v39  ;;  %v1343_v51 = vperm.slane %v1329_v13, %v4023_v28  ;;  %v1347_v55 = vperm.slane %v2932_v48, %v4023_v28  ;;  %v1430_v57 = vpop.f32.mrf.mxu0  ;;  %v3187_v25 = vld [vmem:[%s3632_s18 + $0x98] sm:$0xff]  ;;  %v3191_v31 = vld [vmem:[%s3632_s18 + $0x90] sm:$0xff]  ;;  %v3194_v39 = vld [vmem:[%s3632_s18 + $0x48] sm:$0xff] }
 0x182   : > { %2266 = vmatpush.bf16.msra.mxu1 %v3178_v8  ;;  %v1335_v50 = vpack.i.b16 %v1327_v40, %v1327_v40  ;;  %v1355_v56 = vperm.slane %v2933_v15, %v4023_v28  ;;  %v1363_v16 = vperm.slane %v2934_v14, %v4023_v28  ;;  %v1380_v58 = vsel %vm4256_vm9, %v1339_v17, %v1379_v42  ;;  %v3188_v8 = vld [vmem:[%s3632_s18 + $0xd8] sm:$0xff]  ;;  %v3192_v34 = vld [vmem:[%s3632_s18 + $0xd0] sm:$0xff]  ;;  %v3195_v40 = vld [vmem:[%s3632_s18 + $0x88] sm:$0xff] }
 0x183   : > { %2279 = vmatpush.bf16.msra.mxu2 %v3179_v27  ;;  %v1467_v62 = vpop.f32.mrf.mxu3  ;;  %v1351_v63 = vperm.slane %v1331_v45, %v4023_v28  ;;  %v1359_v0 = vperm.slane %v1333_v49, %v4023_v28  ;;  %1381 = vst [vmem:[%s4039_s6] sm:$0x2] %v1380_v58  ;;  %v1383_v3 = vsel %vm4256_vm9, %v1343_v51, %v1382_v22  ;;  %v3196_v13 = vld [vmem:[%s3632_s18 + $0xc8] sm:$0xff]  ;;  %v3197_v48 = vld [vmem:[%s3632_s18] sm:$0xff] }
 0x184   : > { %2292 = vmatpush.bf16.msra.mxu3 %v3180_v11  ;;  %v1367_v1 = vperm.slane %v1335_v50, %v4023_v28  ;;  %1384 = vst [vmem:[%s4039_s6 + $0x8] sm:$0x2] %v1383_v3  ;;  %v1386_v5 = vsel %vm4256_vm9, %v1347_v55, %v1385_v52  ;;  %v1392_v6 = vsel %vm4256_vm9, %v1355_v56, %v1391_v53  ;;  %v1443_v27 = vpop.f32.mrf.mxu1  ;;  %v3198_v50 = vld [vmem:[%s3632_s18 + $0x40] sm:$0xff] }
 0x185   : > { %2254 = vmatpush.bf16.msra.mxu0 %v3181_v37  ;;  %1387 = vst [vmem:[%s4039_s6 + $0x10] sm:$0x2] %v1386_v5  ;;  %v1389_v26 = vsel %vm4256_vm9, %v1351_v63, %v1388_v59  ;;  %v1395_v2 = vsel %vm4256_vm9, %v1359_v0, %v1394_v60  ;;  %v1398_v33 = vsel %vm4256_vm9, %v1363_v16, %v1397_v4  ;;  %v1456_v35 = vpop.f32.mrf.mxu2  ;;  %v3193_v37 = vld [vmem:[%s3632_s18 + $0x8] sm:$0xff]  ;;  %v3199_v51 = vld [vmem:[%s3632_s18 + $0x80] sm:$0xff]  ;;  %v1721_v4 = vld [vmem:[%s4039_s6 + $0x18] sm:$0x4] }
 0x186   : > { %2267 = vmatpush.bf16.msra.mxu1 %v3182_v46  ;;  %1390 = vst [vmem:[%s4039_s6 + $0x18] sm:$0x2] %v1389_v26  ;;  %v1455_v9 = vadd.f32 %v1454_v54, %v1442_v38  ;;  %v1401_v29 = vsel %vm4256_vm9, %v1367_v1, %v1400_v7  ;;  %vm2239_vm10 = vcmp.eq.s32.totalorder %v3837_v18, %v2238_v32  ;;  %v3200_v16 = vld [vmem:[%s3632_s18 + $0xc0] sm:$0xff]  ;;  %vm1710_vm9 = vsmask.f32 2304 }
 0x187   : > { %2280 = vmatpush.bf16.msra.mxu2 %v3183_v47  ;;  %1393 = vst [vmem:[%s4039_s6 + $0x20] sm:$0x2] %v1392_v6  ;;  %vm2240_vm1 = vcmp.eq.s32.totalorder %v3840_v19, %v2238_v32  ;;  %vm2241_vm2 = vcmp.eq.s32.totalorder %v3843_v20, %v2238_v32  ;;  %vm4322_vm3 = vmpackc.low %vm2239_vm10, %vm2239_vm10  ;;  %vm2242_vm5 = vcmp.eq.s32.totalorder %v3846_v21, %v2238_v32 }
 0x188   : > { %2293 = vmatpush.bf16.msra.mxu3 %v3184_v43  ;;  %1396 = vst [vmem:[%s4039_s6 + $0x28] sm:$0x2] %v1395_v2  ;;  %v1468_v11 = vadd.f32 %v1467_v62, %v1455_v9  ;;  %vm4337_vm6 = vmpackc.low %vm2240_vm1, %vm2240_vm1 }
 0x189   : > { %2255 = vmatpush.bf16.msra.mxu0 %v3185_v61  ;;  %1399 = vst [vmem:[%s4039_s6 + $0x30] sm:$0x2] %v1398_v33  ;;  %vm4347_vm7 = vmpackc.low %vm2241_vm2, %vm2241_vm2  ;;  %vm2043_vm2 = vsmask.f32 3328 }
 0x18a   : > { %2268 = vmatpush.bf16.msra.mxu1 %v3186_v24  ;;  %1402 = vst [vmem:[%s4039_s6 + $0x38] sm:$0x2] %v1401_v29  ;;  %v1471_v36 = vpack.c.bf16 %v1468_v11, %v1468_v11  ;;  %v1545_v56 = vld [vmem:[%s4039_s6] sm:$0x2]  ;;  %vm4363_vm8 = vmpackc.low %vm2242_vm5, %vm2242_vm5 }
 0x18b   : > { %2281 = vmatpush.bf16.msra.mxu2 %v3187_v25  ;;  %v1469_v38 = vpop.f32.mrf.mxu3  ;;  %v1548_v62 = vld [vmem:[%s4039_s6 + $0x8] sm:$0x2]  ;;  %vm4416_vm10 = vmand %vm718_vm13, %vm1710_vm9 }
 0x18c   : > { %2294 = vmatpush.bf16.msra.mxu3 %v3188_v8  ;;  %v1473_v12 = vrot.slane %v1471_v36, 3  ;;  %v1551_v1 = vld [vmem:[%s4039_s6 + $0x10] sm:$0x2]  ;;  %vm4466_vm1 = vmand %vm718_vm13, %vm1876_vm15 }
 0x18d   : > { %2256 = vmatpush.bf16.msra.mxu0 %v3189_v10  ;;  %v1554_v24 = vld [vmem:[%s4039_s6 + $0x18] sm:$0x2] }
 0x18e   : > { %2269 = vmatpush.bf16.msra.mxu1 %v3190_v30  ;;  %v1476_v41 = vsel %vm709_vm11, %v1471_v36, %v1473_v12  ;;  %v1478_v42 = vsel %vm714_vm12, %v1471_v36, %v1473_v12  ;;  %v1481_v18 = vsel %vm718_vm13, %v1471_v36, %v1473_v12  ;;  %v1484_v46 = vsel %vm722_vm14, %v1471_v36, %v1473_v12  ;;  %v1557_v3 = vld [vmem:[%s4039_s6 + $0x20] sm:$0x2] }
 0x18f   : > { %2282 = vmatpush.bf16.msra.mxu2 %v3191_v31  ;;  %v1480_v15 = vrot.slane %v1478_v42, 1  ;;  %v1483_v14 = vrot.slane %v1481_v18, 2  ;;  %v1486_v17 = vrot.slane %v1484_v46, 3  ;;  %v1488_v22 = vunpack.i.h.s16 %v1476_v41  ;;  %v1560_v25 = vld [vmem:[%s4039_s6 + $0x28] sm:$0x2] }
 0x190   : > { %2295 = vmatpush.bf16.msra.mxu3 %v3192_v34  ;;  %v2943_v45 = vpack.i.b16 %v1476_v41, %v1476_v41  ;;  %v1563_v33 = vld [vmem:[%s4039_s6 + $0x30] sm:$0x2] }
 0x191   : > { %2257 = vmatpush.bf16.msra.mxu0 %v3193_v37  ;;  %v1490_v52 = vunpack.i.h.s16 %v1480_v15  ;;  %v1492_v53 = vunpack.i.h.s16 %v1483_v14  ;;  %v1494_v54 = vunpack.i.h.s16 %v1486_v17  ;;  %v1496_v55 = vpack.i.b16 %v1488_v22, %v1488_v22  ;;  %v1566_v29 = vld [vmem:[%s4039_s6 + $0x38] sm:$0x2] }
 0x192   : > { %2270 = vmatpush.bf16.msra.mxu1 %v3194_v39  ;;  %v2944_v58 = vpack.i.b16 %v1480_v15, %v1480_v15  ;;  %v2945_v59 = vpack.i.b16 %v1483_v14, %v1483_v14  ;;  %v2946_v60 = vpack.i.b16 %v1486_v17, %v1486_v17  ;;  %v1506_v61 = vperm.slane %v2943_v45, %v4023_v28 }
 0x193   : > { %2283 = vmatpush.bf16.msra.mxu2 %v3195_v40  ;;  %v1498_v20 = vpack.i.b16 %v1490_v52, %v1490_v52  ;;  %v1500_v57 = vpack.i.b16 %v1492_v53, %v1492_v53  ;;  %v1502_v63 = vpack.i.b16 %v1494_v54, %v1494_v54  ;;  %v1510_v0 = vperm.slane %v1496_v55, %v4023_v28  ;;  %v1712_v54 = vld [vmem:[%s4039_s6] sm:$0x4] }
 0x194   : > { %2296 = vmatpush.bf16.msra.mxu3 %v3196_v13  ;;  %v1514_v5 = vperm.slane %v2944_v58, %v4023_v28  ;;  %v1522_v6 = vperm.slane %v2945_v59, %v4023_v28  ;;  %v1530_v7 = vperm.slane %v2946_v60, %v4023_v28  ;;  %v1546_v21 = vsel %vm4329_vm4, %v1506_v61, %v1545_v56  ;;  %v1715_v58 = vld [vmem:[%s4039_s6 + $0x8] sm:$0x4] }
 0x195   : > { %2258 = vmatpush.bf16.msra.mxu0 %v3197_v48  ;;  %v1518_v26 = vperm.slane %v1498_v20, %v4023_v28  ;;  %v1526_v2 = vperm.slane %v1500_v57, %v4023_v28  ;;  %v1534_v8 = vperm.slane %v1502_v63, %v4023_v28  ;;  %1547 = vst [vmem:[%s4039_s6] sm:$0x2] %v1546_v21  ;;  %v1594_v31 = vpop.f32.mrf.mxu0  ;;  %v1718_v20 = vld [vmem:[%s4039_s6 + $0x10] sm:$0x4]  ;;  %v1724_v57 = vld [vmem:[%s4039_s6 + $0x20] sm:$0x4] }
 0x196   : > { %2271 = vmatpush.bf16.msra.mxu1 %v3198_v50  ;;  %v1549_v27 = vsel %vm4329_vm4, %v1510_v0, %v1548_v62  ;;  %v1552_v9 = vsel %vm4329_vm4, %v1514_v5, %v1551_v1  ;;  %v1558_v10 = vsel %vm4329_vm4, %v1522_v6, %v1557_v3  ;;  %v1564_v32 = vsel %vm4329_vm4, %v1530_v7, %v1563_v33  ;;  %v1607_v35 = vpop.f32.mrf.mxu1  ;;  %v1727_v5 = vld [vmem:[%s4039_s6 + $0x28] sm:$0x4] }
 0x197   : > { %2284 = vmatpush.bf16.msra.mxu2 %v3199_v51  ;;  %1550 = vst [vmem:[%s4039_s6 + $0x8] sm:$0x2] %v1549_v27  ;;  %v1555_v11 = vsel %vm4329_vm4, %v1518_v26, %v1554_v24  ;;  %v1561_v30 = vsel %vm4329_vm4, %v1526_v2, %v1560_v25  ;;  %v1567_v34 = vsel %vm4329_vm4, %v1534_v8, %v1566_v29  ;;  %v1730_v25 = vld [vmem:[%s4039_s6 + $0x30] sm:$0x4]  ;;  %v1733_v8 = vld [vmem:[%s4039_s6 + $0x38] sm:$0x4] }
 0x198   : > { %2297 = vmatpush.bf16.msra.mxu3 %v3200_v16  ;;  %2996 = vmatmul.msk.bf16.vlgmr.msra.gmra.mxu0 %vm4322_vm3, %v3409_v23  ;;  %1553 = vst [vmem:[%s4039_s6 + $0x10] sm:$0x2] %v1552_v9  ;;  %vm4516_vm3 = vmand %vm722_vm14, %vm2043_vm2  ;;  %vm2209_vm4 = vsmask.f32 7950 }
 0x199   : > { %2998 = vmatmul.msk.bf16.vlgmr.msra.gmra.mxu1 %vm4337_vm6, %v3409_v23  ;;  %1556 = vst [vmem:[%s4039_s6 + $0x18] sm:$0x2] %v1555_v11  ;;  %vm4566_vm5 = vmand %vm722_vm14, %vm2209_vm4 }
 0x19a   : > { %3000 = vmatmul.msk.bf16.vlgmr.msra.gmra.mxu2 %vm4347_vm7, %v3409_v23  ;;  %1559 = vst [vmem:[%s4039_s6 + $0x20] sm:$0x2] %v1558_v10 }
 0x19b   : > { %3002 = vmatmul.msk.bf16.vlgmr.msra.gmra.mxu3 %vm4363_vm8, %v3409_v23  ;;  %1562 = vst [vmem:[%s4039_s6 + $0x28] sm:$0x2] %v1561_v30  ;;  %v1608_v23 = vadd.f32 %v1607_v35, %v1594_v31 }
 0x19c   : > { %1565 = vst [vmem:[%s4039_s6 + $0x30] sm:$0x2] %v1564_v32 }
 0x19d   : > { %1568 = vst [vmem:[%s4039_s6 + $0x38] sm:$0x2] %v1567_v34  ;;  %v1620_v36 = vpop.f32.mrf.mxu2  ;;  %v1596_v12 = vpop.f32.mrf.mxu0 }
 0x19e   : > { %v1621_v37 = vadd.f32 %v1620_v36, %v1608_v23  ;;  %v1633_v38 = vpop.f32.mrf.mxu3  ;;  %v1609_v40 = vpop.f32.mrf.mxu1 }
 0x1a0   : > { %v1634_v39 = vadd.f32 %v1633_v38, %v1621_v37 }
 0x1a2   : > { %v1637_v13 = vpack.c.bf16 %v1634_v39, %v1634_v39 }
 0x1a4   : > { %v1639_v41 = vrot.slane %v1637_v13, 3 }
 0x1a5   : > { %v1622_v42 = vpop.f32.mrf.mxu2 }
 0x1a6   : > { %v1642_v18 = vsel %vm709_vm11, %v1637_v13, %v1639_v41  ;;  %v1644_v46 = vsel %vm714_vm12, %v1637_v13, %v1639_v41  ;;  %v1647_v47 = vsel %vm718_vm13, %v1637_v13, %v1639_v41  ;;  %v1650_v48 = vsel %vm722_vm14, %v1637_v13, %v1639_v41  ;;  %v1635_v15 = vpop.f32.mrf.mxu3 }
 0x1a7   : > { %v1646_v14 = vrot.slane %v1644_v46, 1  ;;  %v1649_v17 = vrot.slane %v1647_v47, 2  ;;  %v1652_v22 = vrot.slane %v1650_v48, 3  ;;  %v1654_v43 = vunpack.i.h.s16 %v1642_v18 }
 0x1a8   : > { %v2955_v45 = vpack.i.b16 %v1642_v18, %v1642_v18 }
 0x1a9   : > { %v1656_v49 = vunpack.i.h.s16 %v1646_v14  ;;  %v1658_v50 = vunpack.i.h.s16 %v1649_v17  ;;  %v1660_v51 = vunpack.i.h.s16 %v1652_v22  ;;  %v1662_v52 = vpack.i.b16 %v1654_v43, %v1654_v43 }
 0x1aa   : > { %v2956_v55 = vpack.i.b16 %v1646_v14, %v1646_v14  ;;  %v2957_v56 = vpack.i.b16 %v1649_v17, %v1649_v17  ;;  %v2958_v19 = vpack.i.b16 %v1652_v22, %v1652_v22  ;;  %v1672_v16 = vperm.slane %v2955_v45, %v4023_v28 }
 0x1ab   : > { %v1664_v59 = vpack.i.b16 %v1656_v49, %v1656_v49  ;;  %v1666_v60 = vpack.i.b16 %v1658_v50, %v1658_v50  ;;  %v1668_v61 = vpack.i.b16 %v1660_v51, %v1660_v51  ;;  %v1676_v62 = vperm.slane %v1662_v52, %v4023_v28 }
 0x1ac   : > { %v1680_v63 = vperm.slane %v2956_v55, %v4023_v28  ;;  %v1688_v0 = vperm.slane %v2957_v56, %v4023_v28  ;;  %v1696_v1 = vperm.slane %v2958_v19, %v4023_v28  ;;  %v1713_v3 = vsel %vm4416_vm10, %v1672_v16, %v1712_v54 }
 0x1ad   : > { %v1684_v6 = vperm.slane %v1664_v59, %v4023_v28  ;;  %v1692_v7 = vperm.slane %v1666_v60, %v4023_v28  ;;  %v1700_v21 = vperm.slane %v1668_v61, %v4023_v28  ;;  %1714 = vst [vmem:[%s4039_s6] sm:$0x4] %v1713_v3  ;;  %v1716_v24 = vsel %vm4416_vm10, %v1676_v62, %v1715_v58 }
 0x1ae   : > { %1717 = vst [vmem:[%s4039_s6 + $0x8] sm:$0x4] %v1716_v24  ;;  %v1719_v26 = vsel %vm4416_vm10, %v1680_v63, %v1718_v20  ;;  %v1725_v2 = vsel %vm4416_vm10, %v1688_v0, %v1724_v57  ;;  %v1731_v9 = vsel %vm4416_vm10, %v1696_v1, %v1730_v25 }
 0x1af   : > { %1720 = vst [vmem:[%s4039_s6 + $0x10] sm:$0x4] %v1719_v26  ;;  %v1722_v27 = vsel %vm4416_vm10, %v1684_v6, %v1721_v4  ;;  %v1728_v33 = vsel %vm4416_vm10, %v1692_v7, %v1727_v5  ;;  %v1734_v10 = vsel %vm4416_vm10, %v1700_v21, %v1733_v8 }
 0x1b0   : > { %1723 = vst [vmem:[%s4039_s6 + $0x18] sm:$0x4] %v1722_v27 }
 0x1b1   : > { %1726 = vst [vmem:[%s4039_s6 + $0x20] sm:$0x4] %v1725_v2 }
 0x1b2   : > { %1729 = vst [vmem:[%s4039_s6 + $0x28] sm:$0x4] %v1728_v33 }
 0x1b3   : > { %1732 = vst [vmem:[%s4039_s6 + $0x30] sm:$0x4] %v1731_v9 }
 0x1b4   : > { %1735 = vst [vmem:[%s4039_s6 + $0x38] sm:$0x4] %v1734_v10  ;;  %v1878_v49 = vld [vmem:[%s4039_s6] sm:$0x4] }
 0x1b5   : > { %v1761_v29 = vpop.f32.mrf.mxu0  ;;  %v1881_v54 = vld [vmem:[%s4039_s6 + $0x8] sm:$0x4] }
 0x1b6   : > { %v1774_v11 = vpop.f32.mrf.mxu1  ;;  %v1884_v58 = vld [vmem:[%s4039_s6 + $0x10] sm:$0x4] }
 0x1b7   : > { %v1775_v30 = vadd.f32 %v1774_v11, %v1761_v29  ;;  %v1887_v57 = vld [vmem:[%s4039_s6 + $0x18] sm:$0x4] }
 0x1b8   : > { %v1890_v59 = vld [vmem:[%s4039_s6 + $0x20] sm:$0x4] }
 0x1b9   : > { %v1893_v63 = vld [vmem:[%s4039_s6 + $0x28] sm:$0x4] }
 0x1ba   : > { %v1896_v5 = vld [vmem:[%s4039_s6 + $0x30] sm:$0x4] }
 0x1bb   : > { %v1899_v21 = vld [vmem:[%s4039_s6 + $0x38] sm:$0x4] }
 0x1bd   : > { %v1787_v31 = vpop.f32.mrf.mxu2  ;;  %v1763_v35 = vpop.f32.mrf.mxu0 }
 0x1be   : > { %v1788_v32 = vadd.f32 %v1787_v31, %v1775_v30  ;;  %v1800_v34 = vpop.f32.mrf.mxu3  ;;  %v1776_v36 = vpop.f32.mrf.mxu1 }
 0x1c0   : > { %v1801_v23 = vadd.f32 %v1800_v34, %v1788_v32 }
 0x1c2   : > { %v1804_v37 = vpack.c.bf16 %v1801_v23, %v1801_v23 }
 0x1c4   : > { %v1806_v38 = vrot.slane %v1804_v37, 3 }
 0x1c5   : > { %v1789_v12 = vpop.f32.mrf.mxu2 }
 0x1c6   : > { %v1809_v39 = vsel %vm709_vm11, %v1804_v37, %v1806_v38  ;;  %v1811_v40 = vsel %vm714_vm12, %v1804_v37, %v1806_v38  ;;  %v1814_v13 = vsel %vm718_vm13, %v1804_v37, %v1806_v38  ;;  %v1817_v41 = vsel %vm722_vm14, %v1804_v37, %v1806_v38  ;;  %v1802_v42 = vpop.f32.mrf.mxu3 }
 0x1c7   : > { %v1813_v18 = vrot.slane %v1811_v40, 1  ;;  %v1816_v46 = vrot.slane %v1814_v13, 2  ;;  %v1819_v47 = vrot.slane %v1817_v41, 3  ;;  %v1821_v48 = vunpack.i.h.s16 %v1809_v39 }
 0x1c8   : > { %v2967_v15 = vpack.i.b16 %v1809_v39, %v1809_v39 }
 0x1c9   : > { %v1823_v14 = vunpack.i.h.s16 %v1813_v18  ;;  %v1825_v17 = vunpack.i.h.s16 %v1816_v46  ;;  %v1827_v22 = vunpack.i.h.s16 %v1819_v47  ;;  %v1829_v43 = vpack.i.b16 %v1821_v48, %v1821_v48 }
 0x1ca   : > { %v2968_v50 = vpack.i.b16 %v1813_v18, %v1813_v18  ;;  %v2969_v51 = vpack.i.b16 %v1816_v46, %v1816_v46  ;;  %v2970_v52 = vpack.i.b16 %v1819_v47, %v1819_v47  ;;  %v1839_v53 = vperm.slane %v2967_v15, %v4023_v28 }
 0x1cb   : > { %v1831_v55 = vpack.i.b16 %v1823_v14, %v1823_v14  ;;  %v1833_v56 = vpack.i.b16 %v1825_v17, %v1825_v17  ;;  %v1835_v19 = vpack.i.b16 %v1827_v22, %v1827_v22  ;;  %v1843_v16 = vperm.slane %v1829_v43, %v4023_v28  ;;  %v2045_v14 = vld [vmem:[%s4039_s6] sm:$0x8] }
 0x1cc   : > { %v1847_v60 = vperm.slane %v2968_v50, %v4023_v28  ;;  %v1855_v61 = vperm.slane %v2969_v51, %v4023_v28  ;;  %v1863_v62 = vperm.slane %v2970_v52, %v4023_v28  ;;  %v1879_v20 = vsel %vm4466_vm1, %v1839_v53, %v1878_v49  ;;  %v2048_v49 = vld [vmem:[%s4039_s6 + $0x8] sm:$0x8] }
 0x1cd   : > { %v1851_v0 = vperm.slane %v1831_v55, %v4023_v28  ;;  %v1859_v1 = vperm.slane %v1833_v56, %v4023_v28  ;;  %v1867_v3 = vperm.slane %v1835_v19, %v4023_v28  ;;  %1880 = vst [vmem:[%s4039_s6] sm:$0x4] %v1879_v20  ;;  %v1882_v4 = vsel %vm4466_vm1, %v1843_v16, %v1881_v54  ;;  %v2051_v54 = vld [vmem:[%s4039_s6 + $0x10] sm:$0x8]  ;;  %v2057_v55 = vld [vmem:[%s4039_s6 + $0x20] sm:$0x8] }
 0x1ce   : > { %1883 = vst [vmem:[%s4039_s6 + $0x8] sm:$0x4] %v1882_v4  ;;  %v1885_v6 = vsel %vm4466_vm1, %v1847_v60, %v1884_v58  ;;  %v1891_v7 = vsel %vm4466_vm1, %v1855_v61, %v1890_v59  ;;  %v1897_v26 = vsel %vm4466_vm1, %v1863_v62, %v1896_v5  ;;  %v2054_v59 = vld [vmem:[%s4039_s6 + $0x18] sm:$0x8]  ;;  %v2060_v60 = vld [vmem:[%s4039_s6 + $0x28] sm:$0x8] }
 0x1cf   : > { %1886 = vst [vmem:[%s4039_s6 + $0x10] sm:$0x4] %v1885_v6  ;;  %v1888_v24 = vsel %vm4466_vm1, %v1851_v0, %v1887_v57  ;;  %v1894_v25 = vsel %vm4466_vm1, %v1859_v1, %v1893_v63  ;;  %v1900_v2 = vsel %vm4466_vm1, %v1867_v3, %v1899_v21  ;;  %v2063_v63 = vld [vmem:[%s4039_s6 + $0x30] sm:$0x8]  ;;  %v2066_v3 = vld [vmem:[%s4039_s6 + $0x38] sm:$0x8] }
 0x1d0   : > { %1889 = vst [vmem:[%s4039_s6 + $0x18] sm:$0x4] %v1888_v24 }
 0x1d1   : > { %1892 = vst [vmem:[%s4039_s6 + $0x20] sm:$0x4] %v1891_v7 }
 0x1d2   : > { %1895 = vst [vmem:[%s4039_s6 + $0x28] sm:$0x4] %v1894_v25 }
 0x1d3   : > { %1898 = vst [vmem:[%s4039_s6 + $0x30] sm:$0x4] %v1897_v26 }
 0x1d4   : > { %1901 = vst [vmem:[%s4039_s6 + $0x38] sm:$0x4] %v1900_v2 }
 0x1d5   : > { %v1927_v8 = vpop.f32.mrf.mxu0 }
 0x1d6   : > { %v1940_v27 = vpop.f32.mrf.mxu1 }
 0x1d7   : > { %v1941_v33 = vadd.f32 %v1940_v27, %v1927_v8 }
 0x1dd   : > { %v1953_v9 = vpop.f32.mrf.mxu2  ;;  %v1929_v11 = vpop.f32.mrf.mxu0 }
 0x1de   : > { %v1954_v10 = vadd.f32 %v1953_v9, %v1941_v33  ;;  %v1966_v29 = vpop.f32.mrf.mxu3  ;;  %v1942_v32 = vpop.f32.mrf.mxu1 }
 0x1e0   : > { %v1967_v30 = vadd.f32 %v1966_v29, %v1954_v10 }
 0x1e2   : > { %v1970_v31 = vpack.c.bf16 %v1967_v30, %v1967_v30 }
 0x1e4   : > { %v1972_v34 = vrot.slane %v1970_v31, 3 }
 0x1e5   : > { %v1955_v35 = vpop.f32.mrf.mxu2 }
 0x1e6   : > { %v1975_v23 = vsel %vm709_vm11, %v1970_v31, %v1972_v34  ;;  %v1977_v36 = vsel %vm714_vm12, %v1970_v31, %v1972_v34  ;;  %v1980_v37 = vsel %vm718_vm13, %v1970_v31, %v1972_v34  ;;  %v1983_v38 = vsel %vm722_vm14, %v1970_v31, %v1972_v34  ;;  %v1968_v12 = vpop.f32.mrf.mxu3 }
 0x1e7   : > { %v1979_v39 = vrot.slane %v1977_v36, 1  ;;  %v1982_v40 = vrot.slane %v1980_v37, 2  ;;  %v1985_v13 = vrot.slane %v1983_v38, 3  ;;  %v1987_v41 = vunpack.i.h.s16 %v1975_v23 }
 0x1e8   : > { %v2979_v42 = vpack.i.b16 %v1975_v23, %v1975_v23 }
 0x1e9   : > { %v1989_v18 = vunpack.i.h.s16 %v1979_v39  ;;  %v1991_v46 = vunpack.i.h.s16 %v1982_v40  ;;  %v1993_v47 = vunpack.i.h.s16 %v1985_v13  ;;  %v1995_v48 = vpack.i.b16 %v1987_v41, %v1987_v41 }
 0x1ea   : > { %v2980_v17 = vpack.i.b16 %v1979_v39, %v1979_v39  ;;  %v2981_v22 = vpack.i.b16 %v1982_v40, %v1982_v40  ;;  %v2982_v43 = vpack.i.b16 %v1985_v13, %v1985_v13  ;;  %v2005_v45 = vperm.slane %v2979_v42, %v4023_v28  ;;  %v2378_v42 = vld [vmem:[%s4039_s6 + $0xc] sm:$0x1] }
 0x1eb   : > { %v1997_v50 = vpack.i.b16 %v1989_v18, %v1989_v18  ;;  %v1999_v51 = vpack.i.b16 %v1991_v46, %v1991_v46  ;;  %v2001_v52 = vpack.i.b16 %v1993_v47, %v1993_v47  ;;  %v2009_v53 = vperm.slane %v1995_v48, %v4023_v28 }
 0x1ec   : > { %v2013_v56 = vperm.slane %v2980_v17, %v4023_v28  ;;  %v2021_v19 = vperm.slane %v2981_v22, %v4023_v28  ;;  %v2029_v16 = vperm.slane %v2982_v43, %v4023_v28  ;;  %v2046_v58 = vsel %vm4516_vm3, %v2005_v45, %v2045_v14 }
 0x1ed   : > { %v2017_v61 = vperm.slane %v1997_v50, %v4023_v28  ;;  %v2025_v62 = vperm.slane %v1999_v51, %v4023_v28  ;;  %v2033_v20 = vperm.slane %v2001_v52, %v4023_v28  ;;  %2047 = vst [vmem:[%s4039_s6] sm:$0x8] %v2046_v58  ;;  %v2049_v57 = vsel %vm4516_vm3, %v2009_v53, %v2048_v49 }
 0x1ee   : > { %2050 = vst [vmem:[%s4039_s6 + $0x8] sm:$0x8] %v2049_v57  ;;  %v2052_v0 = vsel %vm4516_vm3, %v2013_v56, %v2051_v54  ;;  %v2058_v1 = vsel %vm4516_vm3, %v2021_v19, %v2057_v55  ;;  %v2064_v6 = vsel %vm4516_vm3, %v2029_v16, %v2063_v63 }
 0x1ef   : > { %2053 = vst [vmem:[%s4039_s6 + $0x10] sm:$0x8] %v2052_v0  ;;  %v2055_v4 = vsel %vm4516_vm3, %v2017_v61, %v2054_v59  ;;  %v2061_v5 = vsel %vm4516_vm3, %v2025_v62, %v2060_v60  ;;  %v2067_v7 = vsel %vm4516_vm3, %v2033_v20, %v2066_v3 }
 0x1f0   : > { %2056 = vst [vmem:[%s4039_s6 + $0x18] sm:$0x8] %v2055_v4 }
 0x1f1   : > { %2059 = vst [vmem:[%s4039_s6 + $0x20] sm:$0x8] %v2058_v1 }
 0x1f2   : > { %2062 = vst [vmem:[%s4039_s6 + $0x28] sm:$0x8] %v2061_v5 }
 0x1f3   : > { %2065 = vst [vmem:[%s4039_s6 + $0x30] sm:$0x8] %v2064_v6 }
 0x1f4   : > { %2068 = vst [vmem:[%s4039_s6 + $0x38] sm:$0x8] %v2067_v7  ;;  %v2211_v18 = vld [vmem:[%s4039_s6] sm:$0x8] }
 0x1f5   : > { %v2094_v21 = vpop.f32.mrf.mxu0  ;;  %v2214_v14 = vld [vmem:[%s4039_s6 + $0x8] sm:$0x8] }
 0x1f6   : > { %v2107_v24 = vpop.f32.mrf.mxu1  ;;  %v2217_v49 = vld [vmem:[%s4039_s6 + $0x10] sm:$0x8] }
 0x1f7   : > { %v2108_v25 = vadd.f32 %v2107_v24, %v2094_v21  ;;  %v2220_v55 = vld [vmem:[%s4039_s6 + $0x18] sm:$0x8] }
 0x1f8   : > { %v2223_v50 = vld [vmem:[%s4039_s6 + $0x20] sm:$0x8] }
 0x1f9   : > { %v2226_v56 = vld [vmem:[%s4039_s6 + $0x28] sm:$0x8] }
 0x1fa   : > { %v2229_v60 = vld [vmem:[%s4039_s6 + $0x30] sm:$0x8] }
 0x1fb   : > { %v2232_v20 = vld [vmem:[%s4039_s6 + $0x38] sm:$0x8] }
 0x1fd   : > { %v2120_v26 = vpop.f32.mrf.mxu2  ;;  %v2096_v33 = vpop.f32.mrf.mxu0 }
 0x1fe   : > { %v2121_v2 = vadd.f32 %v2120_v26, %v2108_v25  ;;  %v2133_v8 = vpop.f32.mrf.mxu3  ;;  %v2109_v9 = vpop.f32.mrf.mxu1 }
 0x200   : > { %v2134_v27 = vadd.f32 %v2133_v8, %v2121_v2 }
 0x202   : > { %v2137_v10 = vpack.c.bf16 %v2134_v27, %v2134_v27 }
 0x204   : > { %v2139_v29 = vrot.slane %v2137_v10, 3 }
 0x205   : > { %v2122_v11 = vpop.f32.mrf.mxu2 }
 0x206   : > { %v2142_v30 = vsel %vm709_vm11, %v2137_v10, %v2139_v29  ;;  %v2144_v31 = vsel %vm714_vm12, %v2137_v10, %v2139_v29  ;;  %v2147_v32 = vsel %vm718_vm13, %v2137_v10, %v2139_v29  ;;  %v2150_v34 = vsel %vm722_vm14, %v2137_v10, %v2139_v29  ;;  %v2135_v35 = vpop.f32.mrf.mxu3 }
 0x207   : > { %v2146_v23 = vrot.slane %v2144_v31, 1  ;;  %v2149_v36 = vrot.slane %v2147_v32, 2  ;;  %v2152_v37 = vrot.slane %v2150_v34, 3  ;;  %v2154_v38 = vunpack.i.h.s16 %v2142_v30 }
 0x208   : > { %v2991_v12 = vpack.i.b16 %v2142_v30, %v2142_v30 }
 0x209   : > { %v2156_v39 = vunpack.i.h.s16 %v2146_v23  ;;  %v2158_v40 = vunpack.i.h.s16 %v2149_v36  ;;  %v2160_v13 = vunpack.i.h.s16 %v2152_v37  ;;  %v2162_v41 = vpack.i.b16 %v2154_v38, %v2154_v38 }
 0x20a   : > { %v2992_v46 = vpack.i.b16 %v2146_v23, %v2146_v23  ;;  %v2993_v47 = vpack.i.b16 %v2149_v36, %v2149_v36  ;;  %v2994_v48 = vpack.i.b16 %v2152_v37, %v2152_v37  ;;  %v2172_v15 = vperm.slane %v2991_v12, %v4023_v28  ;;  %v2375_v12 = vld [vmem:[%s4039_s6 + $0x4] sm:$0x1] }
 0x20b   : > { %v2164_v17 = vpack.i.b16 %v2156_v39, %v2156_v39  ;;  %v2166_v22 = vpack.i.b16 %v2158_v40, %v2158_v40  ;;  %v2168_v43 = vpack.i.b16 %v2160_v13, %v2160_v13  ;;  %v2176_v45 = vperm.slane %v2162_v41, %v4023_v28 }
 0x20c   : > { %v2180_v51 = vperm.slane %v2992_v46, %v4023_v28  ;;  %v2188_v52 = vperm.slane %v2993_v47, %v4023_v28  ;;  %v2196_v53 = vperm.slane %v2994_v48, %v4023_v28  ;;  %v2212_v54 = vsel %vm4566_vm5, %v2172_v15, %v2211_v18  ;;  %v2381_v15 = vld [vmem:[%s4039_s6 + $0x14] sm:$0x1] }
 0x20d   : > { %v2184_v19 = vperm.slane %v2164_v17, %v4023_v28  ;;  %v2192_v16 = vperm.slane %v2166_v22, %v4023_v28  ;;  %v2200_v58 = vperm.slane %v2168_v43, %v4023_v28  ;;  %2213 = vst [vmem:[%s4039_s6] sm:$0x8] %v2212_v54  ;;  %v2215_v59 = vsel %vm4566_vm5, %v2176_v45, %v2214_v14  ;;  %v2387_v14 = vld [vmem:[%s4039_s6 + $0x24] sm:$0x1] }
 0x20e   : > { %2216 = vst [vmem:[%s4039_s6 + $0x8] sm:$0x8] %v2215_v59  ;;  %v2218_v61 = vsel %vm4566_vm5, %v2180_v51, %v2217_v49  ;;  %v2224_v62 = vsel %vm4566_vm5, %v2188_v52, %v2223_v50  ;;  %v2230_v0 = vsel %vm4566_vm5, %v2196_v53, %v2229_v60  ;;  %v2384_v49 = vld [vmem:[%s4039_s6 + $0x1c] sm:$0x1]  ;;  %v2390_v50 = vld [vmem:[%s4039_s6 + $0x2c] sm:$0x1] }
 0x20f   : > { %2219 = vst [vmem:[%s4039_s6 + $0x10] sm:$0x8] %v2218_v61  ;;  %v2221_v57 = vsel %vm4566_vm5, %v2184_v19, %v2220_v55  ;;  %v2227_v63 = vsel %vm4566_vm5, %v2192_v16, %v2226_v56  ;;  %v2233_v1 = vsel %vm4566_vm5, %v2200_v58, %v2232_v20  ;;  %v2393_v55 = vld [vmem:[%s4039_s6 + $0x34] sm:$0x1]  ;;  %v2396_v16 = vld [vmem:[%s4039_s6 + $0x3c] sm:$0x1] }
 0x210   : > { %2222 = vst [vmem:[%s4039_s6 + $0x18] sm:$0x8] %v2221_v57 }
 0x211   : > { %2225 = vst [vmem:[%s4039_s6 + $0x20] sm:$0x8] %v2224_v62 }
 0x212   : > { %2228 = vst [vmem:[%s4039_s6 + $0x28] sm:$0x8] %v2227_v63 }
 0x213   : > { %2231 = vst [vmem:[%s4039_s6 + $0x30] sm:$0x8] %v2230_v0 }
 0x214   : > { %2234 = vst [vmem:[%s4039_s6 + $0x38] sm:$0x8] %v2233_v1  ;;  %v2424_v61 = vld [vmem:[%s4039_s6] sm:$0xf] (%p3492_p10) }
 0x215   : > { %v2260_v3 = vpop.f32.mrf.mxu0  ;;  %v2428_v62 = vld [vmem:[%s4039_s6 + $0x8] sm:$0xf] (%p3492_p10)  ;;  %2425 = vst [vmem:[%s2407_s10] sm:$0xf] (%p3492_p10), %v2424_v61 }
 0x216   : > { %v2273_v4 = vpop.f32.mrf.mxu1  ;;  %v2432_v57 = vld [vmem:[%s4039_s6 + $0x10] sm:$0xf] (%p3492_p10)  ;;  %2429 = vst [vmem:[%s2407_s10 + $0x10] sm:$0xf] (%p3492_p10), %v2428_v62 }
 0x217   : > { %v2274_v5 = vadd.f32 %v2273_v4, %v2260_v3  ;;  %v2436_v0 = vld [vmem:[%s4039_s6 + $0x18] sm:$0xf] (%p3492_p10)  ;;  %2433 = vst [vmem:[%s2407_s10 + $0x20] sm:$0xf] (%p3492_p10), %v2432_v57 }
 0x218   : > { %v2440_v3 = vld [vmem:[%s4039_s6 + $0x20] sm:$0xf] (%p3492_p10)  ;;  %2437 = vst [vmem:[%s2407_s10 + $0x30] sm:$0xf] (%p3492_p10), %v2436_v0 }
 0x219   : > { %2441 = vst [vmem:[%s2407_s10 + $0x40] sm:$0xf] (%p3492_p10), %v2440_v3 }
 0x21d   : > { %v2262_v6 = vpop.f32.mrf.mxu0  ;;  %v2286_v7 = vpop.f32.mrf.mxu2 }
 0x21e   : > { %v2287_v21 = vadd.f32 %v2286_v7, %v2274_v5  ;;  %v2275_v24 = vpop.f32.mrf.mxu1  ;;  %v2299_v25 = vpop.f32.mrf.mxu3  ;;  %v2444_v5 = vld [vmem:[%s4039_s6 + $0x28] sm:$0xf] (%p3492_p10)  ;;  %v2448_v7 = vld [vmem:[%s4039_s6 + $0x30] sm:$0xf] (%p3492_p10) }
 0x21f   : > { %2445 = vst [vmem:[%s2407_s10 + $0x50] sm:$0xf] (%p3492_p10), %v2444_v5  ;;  %v2452_v24 = vld [vmem:[%s4039_s6 + $0x38] sm:$0xf] (%p3492_p10) }
 0x220   : > { %v2300_v26 = vadd.f32 %v2299_v25, %v2287_v21  ;;  %2449 = vst [vmem:[%s2407_s10 + $0x60] sm:$0xf] (%p3492_p10), %v2448_v7 }
 0x221   : > { %2453 = vst [vmem:[%s2407_s10 + $0x70] sm:$0xf] (%p3492_p10), %v2452_v24 }
 0x222   : > { %v2303_v2 = vpack.c.bf16 %v2300_v26, %v2300_v26 }
 0x224   : > { %v2305_v8 = vrot.slane %v2303_v2, 3 }
 0x225   : > { %v2288_v27 = vpop.f32.mrf.mxu2 }
 0x226   : > { %v2308_v33 = vsel %vm709_vm11, %v2303_v2, %v2305_v8  ;;  %v2310_v9 = vsel %vm714_vm12, %v2303_v2, %v2305_v8  ;;  %v2313_v10 = vsel %vm718_vm13, %v2303_v2, %v2305_v8  ;;  %v2316_v29 = vsel %vm722_vm14, %v2303_v2, %v2305_v8  ;;  %v2301_v34 = vpop.f32.mrf.mxu3 }
 0x227   : > { %v2312_v11 = vrot.slane %v2310_v9, 1  ;;  %v2315_v30 = vrot.slane %v2313_v10, 2  ;;  %v2318_v31 = vrot.slane %v2316_v29, 3  ;;  %v2320_v32 = vunpack.i.h.s16 %v2308_v33 }
 0x228   : > { %v3003_v35 = vpack.i.b16 %v2308_v33, %v2308_v33 }
 0x229   : > { %v2322_v23 = vunpack.i.h.s16 %v2312_v11  ;;  %v2324_v36 = vunpack.i.h.s16 %v2315_v30  ;;  %v2326_v37 = vunpack.i.h.s16 %v2318_v31  ;;  %v2328_v38 = vpack.i.b16 %v2320_v32, %v2320_v32 }
 0x22a   : > { %v3004_v39 = vpack.i.b16 %v2312_v11, %v2312_v11  ;;  %v3005_v40 = vpack.i.b16 %v2315_v30, %v2315_v30  ;;  %v3006_v13 = vpack.i.b16 %v2318_v31, %v2318_v31  ;;  %v2338_v41 = vperm.slane %v3003_v35, %v4023_v28 }
 0x22b   : > { %v2330_v18 = vpack.i.b16 %v2322_v23, %v2322_v23  ;;  %v2332_v46 = vpack.i.b16 %v2324_v36, %v2324_v36  ;;  %v2334_v47 = vpack.i.b16 %v2326_v37, %v2326_v37  ;;  %v2342_v48 = vperm.slane %v2328_v38, %v4023_v28 }
 0x22c   : > { %v2346_v17 = vperm.slane %v3004_v39, %v4023_v28  ;;  %v2354_v22 = vperm.slane %v3005_v40, %v4023_v28  ;;  %v2362_v43 = vperm.slane %v3006_v13, %v4023_v28  ;;  %v2376_v45 = vsel %vm4035_vm0, %v2338_v41, %v2375_v12 }
 0x22d   : > { %v2350_v51 = vperm.slane %v2330_v18, %v4023_v28  ;;  %v2358_v52 = vperm.slane %v2332_v46, %v4023_v28  ;;  %v2366_v53 = vperm.slane %v2334_v47, %v4023_v28  ;;  %2377 = vst [vmem:[%s4039_s6 + $0x4] sm:$0x1] %v2376_v45  ;;  %v2379_v54 = vsel %vm4035_vm0, %v2342_v48, %v2378_v42 }
 0x22e   : > { %2380 = vst [vmem:[%s4039_s6 + $0xc] sm:$0x1] %v2379_v54  ;;  %v2382_v56 = vsel %vm4035_vm0, %v2346_v17, %v2381_v15  ;;  %v2388_v19 = vsel %vm4035_vm0, %v2354_v22, %v2387_v14  ;;  %v2394_v59 = vsel %vm4035_vm0, %v2362_v43, %v2393_v55 }
 0x22f   : > { %2383 = vst [vmem:[%s4039_s6 + $0x14] sm:$0x1] %v2382_v56  ;;  %v2385_v58 = vsel %vm4035_vm0, %v2350_v51, %v2384_v49  ;;  %v2391_v28 = vsel %vm4035_vm0, %v2358_v52, %v2390_v50  ;;  %v2397_v60 = vsel %vm4035_vm0, %v2366_v53, %v2396_v16 }
 0x230   : > { %2386 = vst [vmem:[%s4039_s6 + $0x1c] sm:$0x1] %v2385_v58  ;;  %2405 = sbr.rel (!%p3492_p10) target bundleno = 573 (0x23d), region = 64 }
 0x231   : > { %2389 = vst [vmem:[%s4039_s6 + $0x24] sm:$0x1] %v2388_v19 }
 0x232   : > { %2392 = vst [vmem:[%s4039_s6 + $0x2c] sm:$0x1] %v2391_v28 }
 0x233   : > { %2395 = vst [vmem:[%s4039_s6 + $0x34] sm:$0x1] %v2394_v59 }
 0x234   : > { %2398 = vst [vmem:[%s4039_s6 + $0x3c] sm:$0x1] %v2397_v60  ;;  %v2426_v44 = vld [vmem:[%s4039_s6 + $0x4] sm:$0xf] (%p3492_p10) }
 0x235   : > { %v2430_v20 = vld [vmem:[%s4039_s6 + $0xc] sm:$0xf]  ;;  %2427 = vst [vmem:[%s2407_s10 + $0x8] sm:$0xf] %v2426_v44 }
 0x236   : > { %v2434_v63 = vld [vmem:[%s4039_s6 + $0x14] sm:$0xf]  ;;  %2431 = vst [vmem:[%s2407_s10 + $0x18] sm:$0xf] %v2430_v20 }
 0x237   : > { %v2438_v1 = vld [vmem:[%s4039_s6 + $0x1c] sm:$0xf]  ;;  %2435 = vst [vmem:[%s2407_s10 + $0x28] sm:$0xf] %v2434_v63 }
 0x238   : > { %v2442_v4 = vld [vmem:[%s4039_s6 + $0x24] sm:$0xf]  ;;  %2439 = vst [vmem:[%s2407_s10 + $0x38] sm:$0xf] %v2438_v1 }
 0x239   : > { %v2446_v6 = vld [vmem:[%s4039_s6 + $0x2c] sm:$0xf]  ;;  %2443 = vst [vmem:[%s2407_s10 + $0x48] sm:$0xf] %v2442_v4 }
 0x23a   : > { %v2450_v21 = vld [vmem:[%s4039_s6 + $0x34] sm:$0xf]  ;;  %2447 = vst [vmem:[%s2407_s10 + $0x58] sm:$0xf] %v2446_v6 }
 0x23b   : > { %v2454_v25 = vld [vmem:[%s4039_s6 + $0x3c] sm:$0xf]  ;;  %2451 = vst [vmem:[%s2407_s10 + $0x68] sm:$0xf] %v2450_v21 }
 0x23c   : > { %2455 = vst [vmem:[%s2407_s10 + $0x78] sm:$0xf] %v2454_v25 }
 0x23d PF: > { %s4755_s21 = sld [smem:[#allocation15_spill]]  ;;  %s4757_s18 = smov %s3389_s19 }
 0x23e   : > { %s4756_s22 = sld [smem:[#allocation16_spill]]  ;;  %s4758_s19 = smov %s3393_s20 }
 0x243   : > { %p17_p5 = scmp.ge.s32.totalorder %s4755_s21, 4  }
 0x244   : > { %s4759_s20 = smov %s4756_s22 }
 0x245   :  { %19 = sbr.rel (!%p17_p5) target bundleno = 8 (0x8), region = 152 }
 0x24a   :  { %2521 = vsyncpa [#allocation3], 1 }
 0x24b   :  { %2523 = vsyncpa [#allocation3 + $0x1], 1 }
 0x24c   :  { %2524 = vsyncpa [#allocation5], 1 }
 0x24d   :  { %2526 = vsyncpa [#allocation5 + $0x1], 1 }
 0x24e   :  { %2527 = vsyncpa [#allocation8], 1 }

</bundles_post_ra>
